<compile_context>
chip_gen: v7x
topology: tpu7x:2x2x1
jax: 0.10.0
libtpu: 0.0.40
codegen_flags: <defaults>
</compile_context>

<pallas_src>
import jax
import jax.numpy as jnp
from jax.experimental import pallas as pl
from jax.experimental.pallas import tpu as pltpu


_NEG_SLOPE = 0.2
_H1, _H2 = 512, 256
_OUT_LANES = 128          # lane-dense output slab width


def _leaky_relu(x):
    return jnp.where(x > 0, x, _NEG_SLOPE * x)


def _discriminator_kernel(x_ref, w1_ref, b1_ref, w2_ref, b2_ref, w3_ref, b3_ref,
                          o_ref):
    """One batch tile: x[TB, D] -> L1/LReLU -> L2/LReLU -> L3 -> o[TB, 128]."""
    x = x_ref[...]                                            # [TB, D] f32

    # Layer 1: Linear(D, 512) on the MXU (bf16 operands, f32 accumulation).
    h1 = jnp.dot(x.astype(jnp.bfloat16), w1_ref[...],
                 preferred_element_type=jnp.float32)
    h1 = _leaky_relu(h1 + b1_ref[...])                        # [TB, 512] f32

    # Layer 2: Linear(512, 256), same bf16 MXU path.
    h2 = jnp.dot(h1.astype(jnp.bfloat16), w2_ref[...],
                 preferred_element_type=jnp.float32)
    h2 = _leaky_relu(h2 + b2_ref[...])                        # [TB, 256] f32

    # Layer 3: Linear(256, 1). N=1 would use one MXU output lane and force a
    # masked (TB,1) store, so do it on the VPU (multiply) + XLU (lane reduce).
    o = jnp.sum(h2 * w3_ref[...], axis=-1, keepdims=True) + b3_ref[...]  # [TB,1]

    # Lane-dense store: broadcast the scalar column across 128 lanes so the
    # write is an unmasked full-vreg store; wrapper slices column 0 back out.
    o_ref[...] = jnp.broadcast_to(o, o_ref.shape).astype(o_ref.dtype)


def _round_up(x, m):
    return (x + m - 1) // m * m


@jax.jit
def discriminator_forward(img, params):
    """img: [B, C, H, W] float32 (NCHW, matching PyTorch). Returns [B, 1]."""
    w1, b1, w2, b2, w3, b3 = params
    B = img.shape[0]
    x = img.reshape(B, -1).astype(jnp.float32)                # [B, D]
    D = x.shape[1]

    # Batch tile: at least 8 rows (f32 sublane), up to 128 (MXU M sweet spot
    # on v5e's 128-wide MXUs; also fine on v6e/v7x). Pad B to a tile multiple.
    TB = min(128, _round_up(B, 8))
    B_pad = _round_up(B, TB)
    if B_pad != B:
        x = jnp.pad(x, ((0, B_pad - B), (0, 0)))

    # bf16 weights for the MXU path (halves weight DMA + VMEM footprint);
    # biases and the tiny final weight stay f32 for the VPU epilogue.
    # TODO(synk): for very large img_shape (e.g. 3x128x128) w1 no longer fits
    # VMEM as one resident block; add a K-axis grid with an f32 accumulator.
    w1_bf = w1.astype(jnp.bfloat16)                           # [D, 512]
    w2_bf = w2.astype(jnp.bfloat16)                           # [512, 256]
    w3_row = w3.reshape(1, _H2).astype(jnp.float32)           # [1, 256]

    grid = (B_pad // TB,)
    const = lambda i: (0, 0)                                  # weights resident

    flops = 2 * B_pad * (D * _H1 + _H1 * _H2 + _H2)
    bytes_accessed = (B_pad * D * 4 + D * _H1 * 2 + _H1 * _H2 * 2
                      + _H1 * 4 + _H2 * 4 + _H2 * 4 + 4
                      + B_pad * _OUT_LANES * 4)

    out = pl.pallas_call(
        _discriminator_kernel,
        out_shape=jax.ShapeDtypeStruct((B_pad, _OUT_LANES), jnp.float32),
        grid=grid,
        in_specs=[
            pl.BlockSpec((TB, D), lambda i: (i, 0)),          # streamed per tile
            pl.BlockSpec((D, _H1), const),
            pl.BlockSpec((1, _H1), const),
            pl.BlockSpec((_H1, _H2), const),
            pl.BlockSpec((1, _H2), const),
            pl.BlockSpec((1, _H2), const),
            pl.BlockSpec((1, 1), const),
        ],
        out_specs=pl.BlockSpec((TB, _OUT_LANES), lambda i: (i, 0)),
        compiler_params=pltpu.CompilerParams(
            dimension_semantics=("parallel",)),
        cost_estimate=pl.CostEstimate(
            flops=flops, transcendentals=0, bytes_accessed=bytes_accessed),
    )(x, w1_bf, b1, w2_bf, b2, w3_row, b3)

    return out[:B, 0:1]                                       # [B, 1]


def init_params(key, in_features):
    """Deterministic PyTorch-style (uniform +/- 1/sqrt(fan_in)) init."""
    dims = [(in_features, _H1), (_H1, _H2), (_H2, 1)]
    params = []
    for (fan_in, fan_out) in dims:
        key, kw, kb = jax.random.split(key, 3)
        bound = 1.0 / jnp.sqrt(jnp.float32(fan_in))
        # Stored as [in, out] (transposed vs torch's [out, in]) so the kernel
        # computes x @ W directly.
        w = jax.random.uniform(kw, (fan_in, fan_out), jnp.float32, -bound, bound)
        b = jax.random.uniform(kb, (1, fan_out), jnp.float32, -bound, bound)
        params += [w, b]
    return tuple(params)


def reference_forward(img, params):
    """Pure-JAX f32 reference matching the PyTorch module."""
    w1, b1, w2, b2, w3, b3 = params
    x = img.reshape(img.shape[0], -1)
    h1 = x @ w1 + b1
    h1 = jnp.where(h1 > 0, h1, _NEG_SLOPE * h1)
    h2 = h1 @ w2 + b2
    h2 = jnp.where(h2 > 0, h2, _NEG_SLOPE * h2)
    return h2 @ w3 + b3


if __name__ == "__main__":
    key = jax.random.PRNGKey(0)

    # Small shapes consistent with the module default img_shape=(3, 25, 25).
    B, C, H, W = 2, 3, 25, 25
    in_features = C * H * W

    key, k_img, k_params = jax.random.split(key, 3)
    img = jax.random.normal(k_img, (B, C, H, W), jnp.float32)
    params = init_params(k_params, in_features)

    out = discriminator_forward(img, params)
    out = jax.block_until_ready(out)

    ref = reference_forward(img, params)
    assert out.shape == (B, 1), out.shape
    # Tolerance relaxed for the bf16-operand / f32-accumulate MXU path.
    assert jnp.allclose(out, ref, atol=5e-2, rtol=5e-2), (out, ref)

    print("KERNEL_OK")
</pallas_src>

<mosaic_0001>
module attributes {stable_mosaic.version = 11 : i64} {
  func.func @_discriminator_kernel(%arg0: i32, %arg1: memref<8x1875xf32, #tpu.memory_space<vmem>>, %arg2: memref<1875x512xbf16, #tpu.memory_space<vmem>>, %arg3: memref<1x512xf32, #tpu.memory_space<vmem>>, %arg4: memref<512x256xbf16, #tpu.memory_space<vmem>>, %arg5: memref<1x256xf32, #tpu.memory_space<vmem>>, %arg6: memref<1x256xf32, #tpu.memory_space<vmem>>, %arg7: memref<1x1xf32, #tpu.memory_space<vmem>>, %arg8: memref<8x128xf32, #tpu.memory_space<vmem>>) attributes {dimension_semantics = [#tpu.dimension_semantics<parallel>], iteration_bounds = array<i64: 1>, scalar_prefetch = 0 : i64, scratch_operands = 0 : i64, tpu.core_type = #tpu.core_type<tc>, window_params = [{transform_indices = @transform_0, window_bounds = array<i64: 8, 1875>}, {pipeline_mode = #tpu.pipeline_mode<synchronous>, transform_indices = @transform_1, window_bounds = array<i64: 1875, 512>}, {pipeline_mode = #tpu.pipeline_mode<synchronous>, transform_indices = @transform_2, window_bounds = array<i64: 1, 512>}, {pipeline_mode = #tpu.pipeline_mode<synchronous>, transform_indices = @transform_3, window_bounds = array<i64: 512, 256>}, {pipeline_mode = #tpu.pipeline_mode<synchronous>, transform_indices = @transform_4, window_bounds = array<i64: 1, 256>}, {pipeline_mode = #tpu.pipeline_mode<synchronous>, transform_indices = @transform_5, window_bounds = array<i64: 1, 256>}, {pipeline_mode = #tpu.pipeline_mode<synchronous>, transform_indices = @transform_6, window_bounds = array<i64: 1, 1>}, {transform_indices = @transform_7, window_bounds = array<i64: 8, 128>}]} {
    %c0 = arith.constant 0 : index
    %c0_0 = arith.constant 0 : index
    %0 = vector.load %arg1[%c0, %c0_0] : memref<8x1875xf32, #tpu.memory_space<vmem>>, vector<8x1875xf32>
    %1 = arith.truncf %0 : vector<8x1875xf32> to vector<8x1875xbf16>
    %c0_1 = arith.constant 0 : index
    %c0_2 = arith.constant 0 : index
    %2 = vector.load %arg2[%c0_1, %c0_2] : memref<1875x512xbf16, #tpu.memory_space<vmem>>, vector<1875x512xbf16>
    %cst = arith.constant dense<0.000000e+00> : vector<8x512xf32>
    %3 = tpu.matmul %1, %2, %cst {dimension_numbers = #tpu.dot_dimension_numbers<[1], [0], [0], [1], [0, 0, 1, 1], [], []>} : vector<8x1875xbf16>, vector<1875x512xbf16>, vector<8x512xf32> -> vector<8x512xf32>
    %c0_3 = arith.constant 0 : index
    %c0_4 = arith.constant 0 : index
    %4 = vector.load %arg3[%c0_3, %c0_4] : memref<1x512xf32, #tpu.memory_space<vmem>>, vector<1x512xf32>
    %5 = vector.broadcast %4 : vector<1x512xf32> to vector<8x512xf32>
    %6 = arith.addf %3, %5 : vector<8x512xf32>
    %cst_5 = arith.constant 0.000000e+00 : f32
    %7 = vector.broadcast %cst_5 : f32 to vector<8x512xf32>
    %8 = arith.cmpf ogt, %6, %7 : vector<8x512xf32>
    %cst_6 = arith.constant 2.000000e-01 : f32
    %9 = vector.broadcast %cst_6 : f32 to vector<8x512xf32>
    %10 = arith.mulf %9, %6 : vector<8x512xf32>
    %11 = arith.select %8, %6, %10 : vector<8x512xi1>, vector<8x512xf32>
    %12 = arith.truncf %11 : vector<8x512xf32> to vector<8x512xbf16>
    %c0_7 = arith.constant 0 : index
    %c0_8 = arith.constant 0 : index
    %13 = vector.load %arg4[%c0_7, %c0_8] : memref<512x256xbf16, #tpu.memory_space<vmem>>, vector<512x256xbf16>
    %cst_9 = arith.constant dense<0.000000e+00> : vector<8x256xf32>
    %14 = tpu.matmul %12, %13, %cst_9 {dimension_numbers = #tpu.dot_dimension_numbers<[1], [0], [0], [1], [0, 0, 1, 1], [], []>} : vector<8x512xbf16>, vector<512x256xbf16>, vector<8x256xf32> -> vector<8x256xf32>
    %c0_10 = arith.constant 0 : index
    %c0_11 = arith.constant 0 : index
    %15 = vector.load %arg5[%c0_10, %c0_11] : memref<1x256xf32, #tpu.memory_space<vmem>>, vector<1x256xf32>
    %16 = vector.broadcast %15 : vector<1x256xf32> to vector<8x256xf32>
    %17 = arith.addf %14, %16 : vector<8x256xf32>
    %cst_12 = arith.constant 0.000000e+00 : f32
    %18 = vector.broadcast %cst_12 : f32 to vector<8x256xf32>
    %19 = arith.cmpf ogt, %17, %18 : vector<8x256xf32>
    %cst_13 = arith.constant 2.000000e-01 : f32
    %20 = vector.broadcast %cst_13 : f32 to vector<8x256xf32>
    %21 = arith.mulf %20, %17 : vector<8x256xf32>
    %22 = arith.select %19, %17, %21 : vector<8x256xi1>, vector<8x256xf32>
    %c0_14 = arith.constant 0 : index
    %c0_15 = arith.constant 0 : index
    %23 = vector.load %arg6[%c0_14, %c0_15] : memref<1x256xf32, #tpu.memory_space<vmem>>, vector<1x256xf32>
    %24 = vector.broadcast %23 : vector<1x256xf32> to vector<8x256xf32>
    %25 = arith.mulf %22, %24 : vector<8x256xf32>
    %cst_16 = arith.constant dense<0.000000e+00> : vector<8xf32>
    %26 = vector.multi_reduction <add>, %25, %cst_16 [1] : vector<8x256xf32> to vector<8xf32>
    %27 = vector.shape_cast %26 : vector<8xf32> to vector<8x1xf32>
    %c0_17 = arith.constant 0 : index
    %c0_18 = arith.constant 0 : index
    %28 = vector.load %arg7[%c0_17, %c0_18] : memref<1x1xf32, #tpu.memory_space<vmem>>, vector<1x1xf32>
    %29 = vector.broadcast %28 : vector<1x1xf32> to vector<8x1xf32>
    %30 = arith.addf %27, %29 : vector<8x1xf32>
    %31 = vector.shape_cast %30 : vector<8x1xf32> to vector<8x1xf32>
    %32 = vector.broadcast %31 : vector<8x1xf32> to vector<8x128xf32>
    %c0_19 = arith.constant 0 : index
    %c0_20 = arith.constant 0 : index
    %33 = vector.load %arg8[%c0_19, %c0_20] : memref<8x128xf32, #tpu.memory_space<vmem>>, vector<8x128xf32>
    tpu.vector_store %arg8[%c0_19, %c0_20], %32 {strides = array<i32>} : memref<8x128xf32, #tpu.memory_space<vmem>>, vector<8x128xf32>,
    return
  }
  func.func @transform_0(%arg0: i32) -> (i32, i32) {
    %c0_i32 = arith.constant 0 : i32
    %c0_i32_0 = arith.constant 0 : i32
    return %arg0, %c0_i32 : i32, i32
  }
  func.func @transform_1(%arg0: i32) -> (i32, i32) {
    %c0_i32 = arith.constant 0 : i32
    %c0_i32_0 = arith.constant 0 : i32
    %c0_i32_1 = arith.constant 0 : i32
    return %c0_i32, %c0_i32_0 : i32, i32
  }
  func.func @transform_2(%arg0: i32) -> (i32, i32) {
    %c0_i32 = arith.constant 0 : i32
    %c0_i32_0 = arith.constant 0 : i32
    %c0_i32_1 = arith.constant 0 : i32
    return %c0_i32, %c0_i32_0 : i32, i32
  }
  func.func @transform_3(%arg0: i32) -> (i32, i32) {
    %c0_i32 = arith.constant 0 : i32
    %c0_i32_0 = arith.constant 0 : i32
    %c0_i32_1 = arith.constant 0 : i32
    return %c0_i32, %c0_i32_0 : i32, i32
  }
  func.func @transform_4(%arg0: i32) -> (i32, i32) {
    %c0_i32 = arith.constant 0 : i32
    %c0_i32_0 = arith.constant 0 : i32
    %c0_i32_1 = arith.constant 0 : i32
    return %c0_i32, %c0_i32_0 : i32, i32
  }
  func.func @transform_5(%arg0: i32) -> (i32, i32) {
    %c0_i32 = arith.constant 0 : i32
    %c0_i32_0 = arith.constant 0 : i32
    %c0_i32_1 = arith.constant 0 : i32
    return %c0_i32, %c0_i32_0 : i32, i32
  }
  func.func @transform_6(%arg0: i32) -> (i32, i32) {
    %c0_i32 = arith.constant 0 : i32
    %c0_i32_0 = arith.constant 0 : i32
    %c0_i32_1 = arith.constant 0 : i32
    return %c0_i32, %c0_i32_0 : i32, i32
  }
  func.func @transform_7(%arg0: i32) -> (i32, i32) {
    %c0_i32 = arith.constant 0 : i32
    %c0_i32_0 = arith.constant 0 : i32
    return %arg0, %c0_i32 : i32, i32
  }
}

</mosaic_0001>

<bundles_post_ra>
// kernel: discriminator_forward.1
= control target key start
LH: loop header
LB: loop body
LE: loop exit
PB: predicated region body
PF: predicated region fallthrough
CT: control target
= control target key end

     0   :  { %vm2905_vm0 = vcmask 1040384   ;;  %vm2906_vm1 = vcmask 1041408   ;;  %vm2901_vm2 = vcmask 678912   ;;  %s7323_s1 = inlined_call_operand.vmem [shape: bf16[1875,512], index: 1, kind: input, shape index: {}]   ;;  %s7324_s0 = inlined_call_operand.vmem [shape: f32[8,1875], index: 0, kind: input, shape index: {}]   ;;  %s7325_s3 = inlined_call_operand.vmem [shape: bf16[512,256], index: 3, kind: input, shape index: {}]   ;;  %s7326_s2 = inlined_call_operand.vmem [shape: f32[1,512], index: 2, kind: input, shape index: {}]   ;;  %s7327_s6 = inlined_call_operand.<no memory space> [shape: f32[1,1], index: 6, kind: input, shape index: {}]   ;;  %s7328_s4 = inlined_call_operand.vmem [shape: f32[1,256], index: 4, kind: input, shape index: {}]   ;;  %s7329_s5 = inlined_call_operand.vmem [shape: f32[1,256], index: 5, kind: input, shape index: {}]   ;;  %s7330_s7 = inlined_call_operand.vmem [shape: f32[8,128], index: 7, kind: output, shape index: {}]  }
   0x1   :  { %v4718_v0 = vld [vmem:[%s7323_s1 + $0x4] ss:$16 sps:$4 sm:$0xff]   ;;  %v4722_v2 = vld [vmem:[%s7323_s1] ss:$16 sps:$4 sm:$0xff]   ;;  %v30_v46 = vld [vmem:[%s7324_s0 + $0x8] sm:$0xff] }
   0x2   :  { %v4720_v1 = vld [vmem:[%s7323_s1 + $0x204] ss:$16 sps:$4 sm:$0xff]   ;;  %2921 = vmatprep.subr.bf16.mxu1 %v4718_v0  ;;  %v4723_v3 = vld [vmem:[%s7323_s1 + $0x200] ss:$16 sps:$4 sm:$0xff]   ;;  %v5706_v48 = vpack.c.bf16 %v30_v46, %v30_v46  ;;  %v32_v49 = vld [vmem:[%s7324_s0 + $0x18] sm:$0xff] }
   0x3   :  { %2962 = vmatprep.subr.bf16.mxu0 %v4720_v1  ;;  %v4724_v4 = vld [vmem:[%s7323_s1 + $0x24] ss:$16 sps:$4 sm:$0xff]   ;;  %2922 = vmatpush1.bf16.msra.mxu1 %v4722_v2  ;;  %v4728_v6 = vld [vmem:[%s7323_s1 + $0x20] ss:$16 sps:$4 sm:$0xff]   ;;  %v5717_v52 = vpack.c.bf16 %v32_v49, %v32_v49  ;;  %v4871_v49 = vld [vmem:[%s7323_s1 + $0x128] ss:$16 sps:$4 sm:$0xff]  }
   0x4   :  { %2963 = vmatpush1.bf16.msra.mxu0 %v4723_v3  ;;  %v4726_v5 = vld [vmem:[%s7323_s1 + $0x224] ss:$16 sps:$4 sm:$0xff]   ;;  %2923 = vmatprep.subr.bf16.mxu1 %v4724_v4  ;;  %v4729_v7 = vld [vmem:[%s7323_s1 + $0x220] ss:$16 sps:$4 sm:$0xff]  }
   0x5   :  { %2964 = vmatprep.subr.bf16.mxu0 %v4726_v5  ;;  %v4730_v8 = vld [vmem:[%s7323_s1 + $0x44] ss:$16 sps:$4 sm:$0xff]   ;;  %v4734_v10 = vld [vmem:[%s7323_s1 + $0x40] ss:$16 sps:$4 sm:$0xff]   ;;  %2953 = vmatprep.mubr.bf16.mxu1 %v5706_v48 }
   0x6   :  { %v4732_v9 = vld [vmem:[%s7323_s1 + $0x244] ss:$16 sps:$4 sm:$0xff]   ;;  %v4735_v11 = vld [vmem:[%s7323_s1 + $0x240] ss:$16 sps:$4 sm:$0xff]   ;;  %2994 = vmatprep.mubr.bf16.mxu0 %v5717_v52 }
   0x7   :  { %2924 = vmatpush1.bf16.msra.mxu1 %v4728_v6  ;;  %v4736_v12 = vld [vmem:[%s7323_s1 + $0x64] ss:$16 sps:$4 sm:$0xff]   ;;  %v4740_v14 = vld [vmem:[%s7323_s1 + $0x60] ss:$16 sps:$4 sm:$0xff]  }
   0x8   :  { %2965 = vmatpush1.bf16.msra.mxu0 %v4729_v7  ;;  %2925 = vmatprep.subr.bf16.mxu1 %v4730_v8  ;;  %v4738_v13 = vld [vmem:[%s7323_s1 + $0x264] ss:$16 sps:$4 sm:$0xff]   ;;  %v4741_v15 = vld [vmem:[%s7323_s1 + $0x260] ss:$16 sps:$4 sm:$0xff]   ;;  %v4819_v7 = vld [vmem:[%s7323_s1 + $0xc] ss:$16 sps:$4 sm:$0xff]  }
   0x9   :  { %2966 = vmatprep.subr.bf16.mxu0 %v4732_v9  ;;  %v4742_v16 = vld [vmem:[%s7323_s1 + $0x84] ss:$16 sps:$4 sm:$0xff]   ;;  %v4746_v18 = vld [vmem:[%s7323_s1 + $0x80] ss:$16 sps:$4 sm:$0xff]  }
   0xa   :  { %v4744_v17 = vld [vmem:[%s7323_s1 + $0x284] ss:$16 sps:$4 sm:$0xff]   ;;  %v4747_v19 = vld [vmem:[%s7323_s1 + $0x280] ss:$16 sps:$4 sm:$0xff]  }
   0xb   :  { %2926 = vmatpush1.bf16.msra.mxu1 %v4734_v10  ;;  %v4748_v20 = vld [vmem:[%s7323_s1 + $0xa4] ss:$16 sps:$4 sm:$0xff]   ;;  %v4752_v22 = vld [vmem:[%s7323_s1 + $0xa0] ss:$16 sps:$4 sm:$0xff]   ;;  %v4817_v10 = vld [vmem:[%s7323_s1 + $0x8] ss:$16 sps:$4 sm:$0xff]  }
   0xc   :  { %2967 = vmatpush1.bf16.msra.mxu0 %v4735_v11  ;;  %2927 = vmatprep.subr.bf16.mxu1 %v4736_v12  ;;  %v4750_v21 = vld [vmem:[%s7323_s1 + $0x2a4] ss:$16 sps:$4 sm:$0xff]   ;;  %v4753_v23 = vld [vmem:[%s7323_s1 + $0x2a0] ss:$16 sps:$4 sm:$0xff]  }
   0xd   :  { %2968 = vmatprep.subr.bf16.mxu0 %v4738_v13  ;;  %v4754_v24 = vld [vmem:[%s7323_s1 + $0xc4] ss:$16 sps:$4 sm:$0xff]   ;;  %v4758_v26 = vld [vmem:[%s7323_s1 + $0xc0] ss:$16 sps:$4 sm:$0xff]   ;;  %v4825_v13 = vld [vmem:[%s7323_s1 + $0x2c] ss:$16 sps:$4 sm:$0xff]  }
   0xe   :  { %v4756_v25 = vld [vmem:[%s7323_s1 + $0x2c4] ss:$16 sps:$4 sm:$0xff]   ;;  %v4759_v27 = vld [vmem:[%s7323_s1 + $0x2c0] ss:$16 sps:$4 sm:$0xff]  }
   0xf   :  { %2928 = vmatpush1.bf16.msra.mxu1 %v4740_v14  ;;  %v4760_v28 = vld [vmem:[%s7323_s1 + $0xe4] ss:$16 sps:$4 sm:$0xff]   ;;  %v4764_v30 = vld [vmem:[%s7323_s1 + $0xe0] ss:$16 sps:$4 sm:$0xff]  }
  0x10   :  { %2969 = vmatpush1.bf16.msra.mxu0 %v4741_v15  ;;  %2929 = vmatprep.subr.bf16.mxu1 %v4742_v16  ;;  %v4762_v29 = vld [vmem:[%s7323_s1 + $0x2e4] ss:$16 sps:$4 sm:$0xff]   ;;  %v4765_v31 = vld [vmem:[%s7323_s1 + $0x2e0] ss:$16 sps:$4 sm:$0xff]   ;;  %v4823_v15 = vld [vmem:[%s7323_s1 + $0x28] ss:$16 sps:$4 sm:$0xff]  }
  0x11   :  { %2970 = vmatprep.subr.bf16.mxu0 %v4744_v17  ;;  %v4766_v32 = vld [vmem:[%s7323_s1 + $0x104] ss:$16 sps:$4 sm:$0xff]   ;;  %v4770_v34 = vld [vmem:[%s7323_s1 + $0x100] ss:$16 sps:$4 sm:$0xff]   ;;  %v4831_v17 = vld [vmem:[%s7323_s1 + $0x4c] ss:$16 sps:$4 sm:$0xff]  }
  0x12   :  { %v4768_v33 = vld [vmem:[%s7323_s1 + $0x304] ss:$16 sps:$4 sm:$0xff]   ;;  %v4771_v35 = vld [vmem:[%s7323_s1 + $0x300] ss:$16 sps:$4 sm:$0xff]  }
  0x13   :  { %2930 = vmatpush1.bf16.msra.mxu1 %v4746_v18  ;;  %v4772_v36 = vld [vmem:[%s7323_s1 + $0x124] ss:$16 sps:$4 sm:$0xff]   ;;  %v4776_v38 = vld [vmem:[%s7323_s1 + $0x120] ss:$16 sps:$4 sm:$0xff]  }
  0x14   :  { %2971 = vmatpush1.bf16.msra.mxu0 %v4747_v19  ;;  %2931 = vmatprep.subr.bf16.mxu1 %v4748_v20  ;;  %v4774_v37 = vld [vmem:[%s7323_s1 + $0x324] ss:$16 sps:$4 sm:$0xff]   ;;  %v4777_v39 = vld [vmem:[%s7323_s1 + $0x320] ss:$16 sps:$4 sm:$0xff]   ;;  %v4829_v19 = vld [vmem:[%s7323_s1 + $0x48] ss:$16 sps:$4 sm:$0xff]  }
  0x15   :  { %2972 = vmatprep.subr.bf16.mxu0 %v4750_v21  ;;  %v4778_v40 = vld [vmem:[%s7323_s1 + $0x144] ss:$16 sps:$4 sm:$0xff]   ;;  %v4782_v42 = vld [vmem:[%s7323_s1 + $0x140] ss:$16 sps:$4 sm:$0xff]   ;;  %v4837_v21 = vld [vmem:[%s7323_s1 + $0x6c] ss:$16 sps:$4 sm:$0xff]  }
  0x16   :  { %v4780_v41 = vld [vmem:[%s7323_s1 + $0x344] ss:$16 sps:$4 sm:$0xff]   ;;  %v4783_v43 = vld [vmem:[%s7323_s1 + $0x340] ss:$16 sps:$4 sm:$0xff]  }
  0x17   :  { %2932 = vmatpush1.bf16.msra.mxu1 %v4752_v22  ;;  %v4784_v44 = vld [vmem:[%s7323_s1 + $0x164] ss:$16 sps:$4 sm:$0xff]   ;;  %v4788_v47 = vld [vmem:[%s7323_s1 + $0x160] ss:$16 sps:$4 sm:$0xff]  }
  0x18   :  { %2973 = vmatpush1.bf16.msra.mxu0 %v4753_v23  ;;  %2933 = vmatprep.subr.bf16.mxu1 %v4754_v24  ;;  %v4786_v45 = vld [vmem:[%s7323_s1 + $0x364] ss:$16 sps:$4 sm:$0xff]   ;;  %v4789_v50 = vld [vmem:[%s7323_s1 + $0x360] ss:$16 sps:$4 sm:$0xff]   ;;  %v4835_v23 = vld [vmem:[%s7323_s1 + $0x68] ss:$16 sps:$4 sm:$0xff]  }
  0x19   :  { %2974 = vmatprep.subr.bf16.mxu0 %v4756_v25  ;;  %v4790_v51 = vld [vmem:[%s7323_s1 + $0x184] ss:$16 sps:$4 sm:$0xff]   ;;  %v4794_v54 = vld [vmem:[%s7323_s1 + $0x180] ss:$16 sps:$4 sm:$0xff]   ;;  %v4843_v25 = vld [vmem:[%s7323_s1 + $0x8c] ss:$16 sps:$4 sm:$0xff]  }
  0x1a   :  { %v4792_v53 = vld [vmem:[%s7323_s1 + $0x384] ss:$16 sps:$4 sm:$0xff]   ;;  %v4795_v55 = vld [vmem:[%s7323_s1 + $0x380] ss:$16 sps:$4 sm:$0xff]  }
  0x1b   :  { %2934 = vmatpush1.bf16.msra.mxu1 %v4758_v26  ;;  %v4796_v56 = vld [vmem:[%s7323_s1 + $0x1a4] ss:$16 sps:$4 sm:$0xff]   ;;  %v4800_v58 = vld [vmem:[%s7323_s1 + $0x1a0] ss:$16 sps:$4 sm:$0xff]  }
  0x1c   :  { %2975 = vmatpush1.bf16.msra.mxu0 %v4759_v27  ;;  %2935 = vmatprep.subr.bf16.mxu1 %v4760_v28  ;;  %v4798_v57 = vld [vmem:[%s7323_s1 + $0x3a4] ss:$16 sps:$4 sm:$0xff]   ;;  %v4801_v59 = vld [vmem:[%s7323_s1 + $0x3a0] ss:$16 sps:$4 sm:$0xff]   ;;  %v4841_v27 = vld [vmem:[%s7323_s1 + $0x88] ss:$16 sps:$4 sm:$0xff]  }
  0x1d   :  { %2976 = vmatprep.subr.bf16.mxu0 %v4762_v29  ;;  %v4802_v60 = vld [vmem:[%s7323_s1 + $0x1c4] ss:$16 sps:$4 sm:$0xff]   ;;  %v4806_v62 = vld [vmem:[%s7323_s1 + $0x1c0] ss:$16 sps:$4 sm:$0xff]   ;;  %v4849_v29 = vld [vmem:[%s7323_s1 + $0xac] ss:$16 sps:$4 sm:$0xff]  }
  0x1e   :  { %v4804_v61 = vld [vmem:[%s7323_s1 + $0x3c4] ss:$16 sps:$4 sm:$0xff]   ;;  %v4807_v63 = vld [vmem:[%s7323_s1 + $0x3c0] ss:$16 sps:$4 sm:$0xff]  }
  0x1f   :  { %2936 = vmatpush1.bf16.msra.mxu1 %v4764_v30  ;;  %v4808_v0 = vld [vmem:[%s7323_s1 + $0x1e4] ss:$16 sps:$4 sm:$0xff]   ;;  %v4812_v2 = vld [vmem:[%s7323_s1 + $0x1e0] ss:$16 sps:$4 sm:$0xff]  }
  0x20   :  { %2977 = vmatpush1.bf16.msra.mxu0 %v4765_v31  ;;  %2937 = vmatprep.subr.bf16.mxu1 %v4766_v32  ;;  %v4810_v1 = vld [vmem:[%s7323_s1 + $0x3e4] ss:$16 sps:$4 sm:$0xff]   ;;  %v4813_v3 = vld [vmem:[%s7323_s1 + $0x3e0] ss:$16 sps:$4 sm:$0xff]   ;;  %v4847_v31 = vld [vmem:[%s7323_s1 + $0xa8] ss:$16 sps:$4 sm:$0xff]  }
  0x21   :  { %2978 = vmatprep.subr.bf16.mxu0 %v4768_v33  ;;  %v29_v4 = vld [vmem:[%s7324_s0] sm:$0xff]  ;;  %v31_v6 = vld [vmem:[%s7324_s0 + $0x10] sm:$0xff]  ;;  %v4855_v33 = vld [vmem:[%s7323_s1 + $0xcc] ss:$16 sps:$4 sm:$0xff]  }
  0x22   :  { %v4816_v5 = vld [vmem:[%s7323_s1 + $0x404] ss:$16 sps:$4 sm:$0xff]   ;;  %v5778_v8 = vpack.c.bf16 %v29_v4, %v29_v4  ;;  %v4814_v9 = vld [vmem:[%s7323_s1 + $0x400] ss:$16 sps:$4 sm:$0xff]   ;;  %v5786_v11 = vpack.c.bf16 %v31_v6, %v31_v6  ;;  %v4903_v4 = vld [vmem:[%s7323_s1 + $0x1cc] ss:$16 sps:$4 sm:$0xff]  }
  0x23   :  { %2938 = vmatpush1.bf16.msra.mxu1 %v4770_v34  ;;  %v4822_v12 = vld [vmem:[%s7323_s1 + $0x424] ss:$16 sps:$4 sm:$0xff]   ;;  %v4820_v14 = vld [vmem:[%s7323_s1 + $0x420] ss:$16 sps:$4 sm:$0xff]   ;;  %v34_v34 = vld [vmem:[%s7324_s0 + $0x28] sm:$0xff] }
  0x24   :  { %2979 = vmatpush1.bf16.msra.mxu0 %v4771_v35  ;;  %2939 = vmatprep.subr.bf16.mxu1 %v4772_v36  ;;  %v4828_v16 = vld [vmem:[%s7323_s1 + $0x444] ss:$16 sps:$4 sm:$0xff]   ;;  %v4826_v18 = vld [vmem:[%s7323_s1 + $0x440] ss:$16 sps:$4 sm:$0xff]   ;;  %v5863_v36 = vpack.c.bf16 %v34_v34, %v34_v34  ;;  %v4901_v6 = vld [vmem:[%s7323_s1 + $0x1c8] ss:$16 sps:$4 sm:$0xff]  }
  0x25   :  { %2980 = vmatprep.subr.bf16.mxu0 %v4774_v37  ;;  %v4834_v20 = vld [vmem:[%s7323_s1 + $0x464] ss:$16 sps:$4 sm:$0xff]   ;;  %v4832_v22 = vld [vmem:[%s7323_s1 + $0x460] ss:$16 sps:$4 sm:$0xff]   ;;  %v4853_v37 = vld [vmem:[%s7323_s1 + $0xc8] ss:$16 sps:$4 sm:$0xff]  }
  0x26   :  { %v4840_v24 = vld [vmem:[%s7323_s1 + $0x484] ss:$16 sps:$4 sm:$0xff]   ;;  %v4838_v26 = vld [vmem:[%s7323_s1 + $0x480] ss:$16 sps:$4 sm:$0xff]   ;;  %v4937_v34 = vld [vmem:[%s7323_s1 + $0x288] ss:$16 sps:$4 sm:$0xff]  }
  0x27   :  { %2940 = vmatpush1.bf16.msra.mxu1 %v4776_v38  ;;  %v4846_v28 = vld [vmem:[%s7323_s1 + $0x4a4] ss:$16 sps:$4 sm:$0xff]   ;;  %v4844_v30 = vld [vmem:[%s7323_s1 + $0x4a0] ss:$16 sps:$4 sm:$0xff]  }
  0x28   :  { %2981 = vmatpush1.bf16.msra.mxu0 %v4777_v39  ;;  %2941 = vmatprep.subr.bf16.mxu1 %v4778_v40  ;;  %v4852_v32 = vld [vmem:[%s7323_s1 + $0x4c4] ss:$16 sps:$4 sm:$0xff]   ;;  %v4850_v35 = vld [vmem:[%s7323_s1 + $0x4c0] ss:$16 sps:$4 sm:$0xff]   ;;  %v4861_v39 = vld [vmem:[%s7323_s1 + $0xec] ss:$16 sps:$4 sm:$0xff]  }
  0x29   :  { %2982 = vmatprep.subr.bf16.mxu0 %v4780_v41  ;;  %v4858_v38 = vld [vmem:[%s7323_s1 + $0x4e4] ss:$16 sps:$4 sm:$0xff]   ;;  %v4856_v40 = vld [vmem:[%s7323_s1 + $0x4e0] ss:$16 sps:$4 sm:$0xff]   ;;  %v4859_v41 = vld [vmem:[%s7323_s1 + $0xe8] ss:$16 sps:$4 sm:$0xff]  }
  0x2a   :  { %v4870_v46 = vld [vmem:[%s7323_s1 + $0x524] ss:$16 sps:$4 sm:$0xff]  }
  0x2b   :  { %2942 = vmatpush1.bf16.msra.mxu1 %v4782_v42  ;;  %v4864_v42 = vld [vmem:[%s7323_s1 + $0x504] ss:$16 sps:$4 sm:$0xff]  }
  0x2c   :  { %2983 = vmatpush1.bf16.msra.mxu0 %v4783_v43  ;;  %2943 = vmatprep.subr.bf16.mxu1 %v4784_v44  ;;  %v4867_v43 = vld [vmem:[%s7323_s1 + $0x10c] ss:$16 sps:$4 sm:$0xff]   ;;  %v4862_v44 = vld [vmem:[%s7323_s1 + $0x500] ss:$16 sps:$4 sm:$0xff]  }
  0x2d   :  { %2984 = vmatprep.subr.bf16.mxu0 %v4786_v45  ;;  %v4865_v45 = vld [vmem:[%s7323_s1 + $0x108] ss:$16 sps:$4 sm:$0xff]  }
  0x2f   :  { %2944 = vmatpush1.bf16.msra.mxu1 %v4788_v47  ;;  %v4873_v47 = vld [vmem:[%s7323_s1 + $0x12c] ss:$16 sps:$4 sm:$0xff]  }
  0x30   :  { %2985 = vmatpush1.bf16.msra.mxu0 %v4789_v50  ;;  %2945 = vmatprep.subr.bf16.mxu1 %v4790_v51  ;;  %v4876_v50 = vld [vmem:[%s7323_s1 + $0x544] ss:$16 sps:$4 sm:$0xff]   ;;  %v4879_v51 = vld [vmem:[%s7323_s1 + $0x14c] ss:$16 sps:$4 sm:$0xff]  }
  0x31   :  { %2986 = vmatprep.subr.bf16.mxu0 %v4792_v53  ;;  %v4874_v53 = vld [vmem:[%s7323_s1 + $0x540] ss:$16 sps:$4 sm:$0xff]  }
  0x33   :  { %2946 = vmatpush1.bf16.msra.mxu1 %v4794_v54  ;;  %v4877_v54 = vld [vmem:[%s7323_s1 + $0x148] ss:$16 sps:$4 sm:$0xff]  }
  0x34   :  { %2987 = vmatpush1.bf16.msra.mxu0 %v4795_v55  ;;  %2947 = vmatprep.subr.bf16.mxu1 %v4796_v56  ;;  %v4882_v55 = vld [vmem:[%s7323_s1 + $0x564] ss:$16 sps:$4 sm:$0xff]   ;;  %v4885_v56 = vld [vmem:[%s7323_s1 + $0x16c] ss:$16 sps:$4 sm:$0xff]  }
  0x35   :  { %2988 = vmatprep.subr.bf16.mxu0 %v4798_v57  ;;  %v4880_v57 = vld [vmem:[%s7323_s1 + $0x560] ss:$16 sps:$4 sm:$0xff]  }
  0x37   :  { %2948 = vmatpush1.bf16.msra.mxu1 %v4800_v58  ;;  %v4883_v58 = vld [vmem:[%s7323_s1 + $0x168] ss:$16 sps:$4 sm:$0xff]  }
  0x38   :  { %2989 = vmatpush1.bf16.msra.mxu0 %v4801_v59  ;;  %2949 = vmatprep.subr.bf16.mxu1 %v4802_v60  ;;  %v4888_v59 = vld [vmem:[%s7323_s1 + $0x584] ss:$16 sps:$4 sm:$0xff]   ;;  %v4891_v60 = vld [vmem:[%s7323_s1 + $0x18c] ss:$16 sps:$4 sm:$0xff]  }
  0x39   :  { %2990 = vmatprep.subr.bf16.mxu0 %v4804_v61  ;;  %v4886_v61 = vld [vmem:[%s7323_s1 + $0x580] ss:$16 sps:$4 sm:$0xff]  }
  0x3b   :  { %2950 = vmatpush1.bf16.msra.mxu1 %v4806_v62  ;;  %v4889_v62 = vld [vmem:[%s7323_s1 + $0x188] ss:$16 sps:$4 sm:$0xff]  }
  0x3c   :  { %2991 = vmatpush1.bf16.msra.mxu0 %v4807_v63  ;;  %2951 = vmatprep.subr.bf16.mxu1 %v4808_v0  ;;  %v4894_v63 = vld [vmem:[%s7323_s1 + $0x5a4] ss:$16 sps:$4 sm:$0xff]   ;;  %v4897_v0 = vld [vmem:[%s7323_s1 + $0x1ac] ss:$16 sps:$4 sm:$0xff]  }
  0x3d   :  { %2992 = vmatprep.subr.bf16.mxu0 %v4810_v1  ;;  %v4892_v1 = vld [vmem:[%s7323_s1 + $0x5a0] ss:$16 sps:$4 sm:$0xff]  }
  0x3f   :  { %2952 = vmatpush1.bf16.msra.mxu1 %v4812_v2  ;;  %v4895_v2 = vld [vmem:[%s7323_s1 + $0x1a8] ss:$16 sps:$4 sm:$0xff]  }
  0x40   :  { %2993 = vmatpush1.bf16.msra.mxu0 %v4813_v3  ;;  %3249 = vmatprep.subr.bf16.mxu1 %v4819_v7  ;;  %v4900_v3 = vld [vmem:[%s7323_s1 + $0x5c4] ss:$16 sps:$4 sm:$0xff]  }
  0x41   :  { %3003 = vmatprep.subr.bf16.mxu0 %v4816_v5  ;;  %v4898_v5 = vld [vmem:[%s7323_s1 + $0x5c0] ss:$16 sps:$4 sm:$0xff]   ;;  %v4906_v7 = vld [vmem:[%s7323_s1 + $0x5e4] ss:$16 sps:$4 sm:$0xff]  }
  0x42   :  { %2954 = vmatmul.mubr.bf16.vlgmr.msra.gmra.mrb[0].mxu1 %v5778_v8 }
  0x43   :  { %2995 = vmatmul.mubr.bf16.vlgmr.msra.gmra.mrb[0].mxu0 %v5786_v11  ;;  %3250 = vmatpush1.bf16.msra.mxu1 %v4817_v10  ;;  %v4904_v10 = vld [vmem:[%s7323_s1 + $0x5e0] ss:$16 sps:$4 sm:$0xff]  }
  0x44   :  { %3004 = vmatpush1.bf16.msra.mxu0 %v4814_v9  ;;  %3251 = vmatprep.subr.bf16.mxu1 %v4825_v13  ;;  %v4909_v9 = vld [vmem:[%s7323_s1 + $0x1ec] ss:$16 sps:$4 sm:$0xff]   ;;  %v33_v13 = vld [vmem:[%s7324_s0 + $0x20] sm:$0xff] }
  0x45   :  { %3005 = vmatprep.subr.bf16.mxu0 %v4822_v12  ;;  %3281 = vmatprep.mubr.bf16.mxu1 %v5706_v48  ;;  %v4868_v48 = vld [vmem:[%s7323_s1 + $0x520] ss:$16 sps:$4 sm:$0xff]   ;;  %v4907_v12 = vld [vmem:[%s7323_s1 + $0x1e8] ss:$16 sps:$4 sm:$0xff]  }
  0x46   :  { %3035 = vmatprep.mubr.bf16.mxu0 %v5863_v36 }
  0x47   :  { %3252 = vmatpush1.bf16.msra.mxu1 %v4823_v15  ;;  %v4915_v15 = vld [vmem:[%s7323_s1 + $0x20c] ss:$16 sps:$4 sm:$0xff]  }
  0x48   :  { %3006 = vmatpush1.bf16.msra.mxu0 %v4820_v14  ;;  %3253 = vmatprep.subr.bf16.mxu1 %v4831_v17  ;;  %v4912_v14 = vld [vmem:[%s7323_s1 + $0x604] ss:$16 sps:$4 sm:$0xff]   ;;  %v4910_v17 = vld [vmem:[%s7323_s1 + $0x600] ss:$16 sps:$4 sm:$0xff]  }
  0x49   :  { %3007 = vmatprep.subr.bf16.mxu0 %v4828_v16  ;;  %v5986_v16 = vpack.c.bf16 %v33_v13, %v33_v13  ;;  %v4994_v13 = vld [vmem:[%s7323_s1 + $0x7c0] ss:$16 sps:$4 sm:$0xff]  }
  0x4b   :  { %3254 = vmatpush1.bf16.msra.mxu1 %v4829_v19  ;;  %v4918_v19 = vld [vmem:[%s7323_s1 + $0x624] ss:$16 sps:$4 sm:$0xff]  }
  0x4c   :  { %3008 = vmatpush1.bf16.msra.mxu0 %v4826_v18  ;;  %3255 = vmatprep.subr.bf16.mxu1 %v4837_v21  ;;  %v4913_v18 = vld [vmem:[%s7323_s1 + $0x208] ss:$16 sps:$4 sm:$0xff]  }
  0x4d   :  { %3009 = vmatprep.subr.bf16.mxu0 %v4834_v20  ;;  %v4921_v20 = vld [vmem:[%s7323_s1 + $0x22c] ss:$16 sps:$4 sm:$0xff]  }
  0x4e   :  { %v36_v21 = vld [vmem:[%s7324_s0 + $0x38] sm:$0xff] }
  0x4f   :  { %3256 = vmatpush1.bf16.msra.mxu1 %v4835_v23  ;;  %v6008_v23 = vpack.c.bf16 %v36_v21, %v36_v21  ;;  %v35_v21 = vld [vmem:[%s7324_s0 + $0x30] sm:$0xff] }
  0x50   :  { %3010 = vmatpush1.bf16.msra.mxu0 %v4832_v22  ;;  %3257 = vmatprep.subr.bf16.mxu1 %v4843_v25  ;;  %v4916_v22 = vld [vmem:[%s7323_s1 + $0x620] ss:$16 sps:$4 sm:$0xff]   ;;  %v4924_v25 = vld [vmem:[%s7323_s1 + $0x644] ss:$16 sps:$4 sm:$0xff]  }
  0x51   :  { %3011 = vmatprep.subr.bf16.mxu0 %v4840_v24  ;;  %v4919_v24 = vld [vmem:[%s7323_s1 + $0x228] ss:$16 sps:$4 sm:$0xff]  }
  0x53   :  { %3258 = vmatpush1.bf16.msra.mxu1 %v4841_v27  ;;  %v4925_v27 = vld [vmem:[%s7323_s1 + $0x248] ss:$16 sps:$4 sm:$0xff]  }
  0x54   :  { %3012 = vmatpush1.bf16.msra.mxu0 %v4838_v26  ;;  %3259 = vmatprep.subr.bf16.mxu1 %v4849_v29  ;;  %v4922_v26 = vld [vmem:[%s7323_s1 + $0x640] ss:$16 sps:$4 sm:$0xff]  }
  0x55   :  { %3013 = vmatprep.subr.bf16.mxu0 %v4846_v28  ;;  %v4930_v28 = vld [vmem:[%s7323_s1 + $0x664] ss:$16 sps:$4 sm:$0xff]   ;;  %v4928_v29 = vld [vmem:[%s7323_s1 + $0x660] ss:$16 sps:$4 sm:$0xff]  }
  0x57   :  { %3260 = vmatpush1.bf16.msra.mxu1 %v4847_v31  ;;  %v4936_v31 = vld [vmem:[%s7323_s1 + $0x684] ss:$16 sps:$4 sm:$0xff]  }
  0x58   :  { %3014 = vmatpush1.bf16.msra.mxu0 %v4844_v30  ;;  %3261 = vmatprep.subr.bf16.mxu1 %v4855_v33  ;;  %v4931_v30 = vld [vmem:[%s7323_s1 + $0x268] ss:$16 sps:$4 sm:$0xff]   ;;  %v4934_v33 = vld [vmem:[%s7323_s1 + $0x680] ss:$16 sps:$4 sm:$0xff]  }
  0x59   :  { %3015 = vmatprep.subr.bf16.mxu0 %v4852_v32  ;;  %v4939_v32 = vld [vmem:[%s7323_s1 + $0x28c] ss:$16 sps:$4 sm:$0xff]  }
  0x5b   :  { %3262 = vmatpush1.bf16.msra.mxu1 %v4853_v37  ;;  %v4945_v37 = vld [vmem:[%s7323_s1 + $0x2ac] ss:$16 sps:$4 sm:$0xff]  }
  0x5c   :  { %3016 = vmatpush1.bf16.msra.mxu0 %v4850_v35  ;;  %3263 = vmatprep.subr.bf16.mxu1 %v4861_v39  ;;  %v4942_v35 = vld [vmem:[%s7323_s1 + $0x6a4] ss:$16 sps:$4 sm:$0xff]   ;;  %v4943_v39 = vld [vmem:[%s7323_s1 + $0x2a8] ss:$16 sps:$4 sm:$0xff]  }
  0x5d   :  { %3017 = vmatprep.subr.bf16.mxu0 %v4858_v38  ;;  %v4940_v38 = vld [vmem:[%s7323_s1 + $0x6a0] ss:$16 sps:$4 sm:$0xff]  }
  0x5f   :  { %3264 = vmatpush1.bf16.msra.mxu1 %v4859_v41  ;;  %v4951_v41 = vld [vmem:[%s7323_s1 + $0x2cc] ss:$16 sps:$4 sm:$0xff]  }
  0x60   :  { %3018 = vmatpush1.bf16.msra.mxu0 %v4856_v40  ;;  %3265 = vmatprep.subr.bf16.mxu1 %v4867_v43  ;;  %v4948_v40 = vld [vmem:[%s7323_s1 + $0x6c4] ss:$16 sps:$4 sm:$0xff]   ;;  %v4949_v43 = vld [vmem:[%s7323_s1 + $0x2c8] ss:$16 sps:$4 sm:$0xff]  }
  0x61   :  { %3019 = vmatprep.subr.bf16.mxu0 %v4864_v42  ;;  %v4946_v42 = vld [vmem:[%s7323_s1 + $0x6c0] ss:$16 sps:$4 sm:$0xff]  }
  0x63   :  { %3266 = vmatpush1.bf16.msra.mxu1 %v4865_v45  ;;  %v4957_v45 = vld [vmem:[%s7323_s1 + $0x2ec] ss:$16 sps:$4 sm:$0xff]  }
  0x64   :  { %3020 = vmatpush1.bf16.msra.mxu0 %v4862_v44  ;;  %3267 = vmatprep.subr.bf16.mxu1 %v4873_v47  ;;  %v4954_v44 = vld [vmem:[%s7323_s1 + $0x6e4] ss:$16 sps:$4 sm:$0xff]   ;;  %v4955_v47 = vld [vmem:[%s7323_s1 + $0x2e8] ss:$16 sps:$4 sm:$0xff]  }
  0x65   :  { %3021 = vmatprep.subr.bf16.mxu0 %v4870_v46  ;;  %v4952_v46 = vld [vmem:[%s7323_s1 + $0x6e0] ss:$16 sps:$4 sm:$0xff]  }
  0x67   :  { %3268 = vmatpush1.bf16.msra.mxu1 %v4871_v49  ;;  %v4963_v49 = vld [vmem:[%s7323_s1 + $0x30c] ss:$16 sps:$4 sm:$0xff]  }
  0x68   :  { %3022 = vmatpush1.bf16.msra.mxu0 %v4868_v48  ;;  %3269 = vmatprep.subr.bf16.mxu1 %v4879_v51  ;;  %v4960_v48 = vld [vmem:[%s7323_s1 + $0x704] ss:$16 sps:$4 sm:$0xff]   ;;  %v4961_v51 = vld [vmem:[%s7323_s1 + $0x308] ss:$16 sps:$4 sm:$0xff]  }
  0x69   :  { %3023 = vmatprep.subr.bf16.mxu0 %v4876_v50  ;;  %v4958_v50 = vld [vmem:[%s7323_s1 + $0x700] ss:$16 sps:$4 sm:$0xff]  }
  0x6b   :  { %3270 = vmatpush1.bf16.msra.mxu1 %v4877_v54  ;;  %v4969_v54 = vld [vmem:[%s7323_s1 + $0x32c] ss:$16 sps:$4 sm:$0xff]  }
  0x6c   :  { %3024 = vmatpush1.bf16.msra.mxu0 %v4874_v53  ;;  %3271 = vmatprep.subr.bf16.mxu1 %v4885_v56  ;;  %v4966_v53 = vld [vmem:[%s7323_s1 + $0x724] ss:$16 sps:$4 sm:$0xff]   ;;  %v4967_v56 = vld [vmem:[%s7323_s1 + $0x328] ss:$16 sps:$4 sm:$0xff]  }
  0x6d   :  { %3025 = vmatprep.subr.bf16.mxu0 %v4882_v55  ;;  %v4964_v55 = vld [vmem:[%s7323_s1 + $0x720] ss:$16 sps:$4 sm:$0xff]  }
  0x6f   :  { %3272 = vmatpush1.bf16.msra.mxu1 %v4883_v58  ;;  %v4975_v58 = vld [vmem:[%s7323_s1 + $0x34c] ss:$16 sps:$4 sm:$0xff]  }
  0x70   :  { %3026 = vmatpush1.bf16.msra.mxu0 %v4880_v57  ;;  %3273 = vmatprep.subr.bf16.mxu1 %v4891_v60  ;;  %v4972_v57 = vld [vmem:[%s7323_s1 + $0x744] ss:$16 sps:$4 sm:$0xff]   ;;  %v4973_v60 = vld [vmem:[%s7323_s1 + $0x348] ss:$16 sps:$4 sm:$0xff]  }
  0x71   :  { %3027 = vmatprep.subr.bf16.mxu0 %v4888_v59  ;;  %v4970_v59 = vld [vmem:[%s7323_s1 + $0x740] ss:$16 sps:$4 sm:$0xff]  }
  0x73   :  { %3274 = vmatpush1.bf16.msra.mxu1 %v4889_v62  ;;  %v4981_v62 = vld [vmem:[%s7323_s1 + $0x36c] ss:$16 sps:$4 sm:$0xff]  }
  0x74   :  { %3028 = vmatpush1.bf16.msra.mxu0 %v4886_v61  ;;  %3275 = vmatprep.subr.bf16.mxu1 %v4897_v0  ;;  %v4978_v61 = vld [vmem:[%s7323_s1 + $0x764] ss:$16 sps:$4 sm:$0xff]   ;;  %v4979_v0 = vld [vmem:[%s7323_s1 + $0x368] ss:$16 sps:$4 sm:$0xff]  }
  0x75   :  { %3029 = vmatprep.subr.bf16.mxu0 %v4894_v63  ;;  %v4976_v63 = vld [vmem:[%s7323_s1 + $0x760] ss:$16 sps:$4 sm:$0xff]  }
  0x77   :  { %3276 = vmatpush1.bf16.msra.mxu1 %v4895_v2  ;;  %v4987_v2 = vld [vmem:[%s7323_s1 + $0x38c] ss:$16 sps:$4 sm:$0xff]  }
  0x78   :  { %3030 = vmatpush1.bf16.msra.mxu0 %v4892_v1  ;;  %3277 = vmatprep.subr.bf16.mxu1 %v4903_v4  ;;  %v4984_v1 = vld [vmem:[%s7323_s1 + $0x784] ss:$16 sps:$4 sm:$0xff]   ;;  %v4985_v4 = vld [vmem:[%s7323_s1 + $0x388] ss:$16 sps:$4 sm:$0xff]  }
  0x79   :  { %3031 = vmatprep.subr.bf16.mxu0 %v4900_v3  ;;  %v4982_v3 = vld [vmem:[%s7323_s1 + $0x780] ss:$16 sps:$4 sm:$0xff]  }
  0x7b   :  { %3278 = vmatpush1.bf16.msra.mxu1 %v4901_v6  ;;  %v4993_v6 = vld [vmem:[%s7323_s1 + $0x3ac] ss:$16 sps:$4 sm:$0xff]  }
  0x7c   :  { %3032 = vmatpush1.bf16.msra.mxu0 %v4898_v5  ;;  %3279 = vmatprep.subr.bf16.mxu1 %v4909_v9  ;;  %v4990_v5 = vld [vmem:[%s7323_s1 + $0x7a4] ss:$16 sps:$4 sm:$0xff]   ;;  %v4991_v9 = vld [vmem:[%s7323_s1 + $0x3a8] ss:$16 sps:$4 sm:$0xff]  }
  0x7d   :  { %3033 = vmatprep.subr.bf16.mxu0 %v4906_v7  ;;  %v4988_v7 = vld [vmem:[%s7323_s1 + $0x7a0] ss:$16 sps:$4 sm:$0xff]  }
  0x7f   :  { %3280 = vmatpush1.bf16.msra.mxu1 %v4907_v12  ;;  %v4999_v12 = vld [vmem:[%s7323_s1 + $0x3cc] ss:$16 sps:$4 sm:$0xff]  }
  0x80   :  { %3034 = vmatpush1.bf16.msra.mxu0 %v4904_v10  ;;  %3290 = vmatprep.subr.bf16.mxu1 %v4915_v15  ;;  %v4996_v10 = vld [vmem:[%s7323_s1 + $0x7c4] ss:$16 sps:$4 sm:$0xff]  }
  0x81   :  { %3044 = vmatprep.subr.bf16.mxu0 %v4912_v14  ;;  %v4997_v14 = vld [vmem:[%s7323_s1 + $0x3c8] ss:$16 sps:$4 sm:$0xff]   ;;  %v5002_v15 = vld [vmem:[%s7323_s1 + $0x7e4] ss:$16 sps:$4 sm:$0xff]  }
  0x82   :  { %3282 = vmatmul.mubr.bf16.vlgmr.msra.gmra.mrb[4].mxu1 %v5778_v8  ;;  %v4927_v8 = vld [vmem:[%s7323_s1 + $0x24c] ss:$16 sps:$4 sm:$0xff]  }
  0x83   :  { %3036 = vmatmul.mubr.bf16.vlgmr.msra.gmra.mrb[0].mxu0 %v5986_v16  ;;  %3291 = vmatpush1.bf16.msra.mxu1 %v4913_v18  ;;  %v5000_v18 = vld [vmem:[%s7323_s1 + $0x7e0] ss:$16 sps:$4 sm:$0xff]  }
  0x84   :  { %3045 = vmatpush1.bf16.msra.mxu0 %v4910_v17  ;;  %3292 = vmatprep.subr.bf16.mxu1 %v4921_v20  ;;  %v5005_v17 = vld [vmem:[%s7323_s1 + $0x3ec] ss:$16 sps:$4 sm:$0xff]   ;;  %v5008_v20 = vld [vmem:[%s7323_s1 + $0x804] ss:$16 sps:$4 sm:$0xff]  }
  0x85   :  { %3046 = vmatprep.subr.bf16.mxu0 %v4918_v19  ;;  %3076 = vmatprep.mubr.bf16.mxu0 %v6008_v23  ;;  %v5003_v19 = vld [vmem:[%s7323_s1 + $0x3e8] ss:$16 sps:$4 sm:$0xff]  }
  0x86   :  { %3322 = vmatprep.mubr.bf16.mxu1 %v5717_v52  ;;  %v4933_v52 = vld [vmem:[%s7323_s1 + $0x26c] ss:$16 sps:$4 sm:$0xff]  }
  0x87   :  { %3293 = vmatpush1.bf16.msra.mxu1 %v4919_v24  ;;  %v5006_v24 = vld [vmem:[%s7323_s1 + $0x800] ss:$16 sps:$4 sm:$0xff]  }
  0x88   :  { %3047 = vmatpush1.bf16.msra.mxu0 %v4916_v22  ;;  %3294 = vmatprep.subr.bf16.mxu1 %v4927_v8  ;;  %v5011_v22 = vld [vmem:[%s7323_s1 + $0x40c] ss:$16 sps:$4 sm:$0xff]  }
  0x89   :  { %3048 = vmatprep.subr.bf16.mxu0 %v4924_v25  ;;  %v6195_v25 = vpack.c.bf16 %v35_v21, %v35_v21  ;;  %v38_v8 = vld [vmem:[%s7324_s0 + $0x48] sm:$0xff] }
  0x8a   :  { %v5093_v21 = vld [vmem:[%s7323_s1 + $0x5c8] ss:$16 sps:$4 sm:$0xff]  }
  0x8b   :  { %3295 = vmatpush1.bf16.msra.mxu1 %v4925_v27  ;;  %v5014_v27 = vld [vmem:[%s7323_s1 + $0x824] ss:$16 sps:$4 sm:$0xff]  }
  0x8c   :  { %3049 = vmatpush1.bf16.msra.mxu0 %v4922_v26  ;;  %3296 = vmatprep.subr.bf16.mxu1 %v4933_v52  ;;  %v5009_v26 = vld [vmem:[%s7323_s1 + $0x408] ss:$16 sps:$4 sm:$0xff]   ;;  %v6209_v52 = vpack.c.bf16 %v38_v8, %v38_v8  ;;  %v5096_v8 = vld [vmem:[%s7323_s1 + $0x9e0] ss:$16 sps:$4 sm:$0xff]  }
  0x8d   :  { %3050 = vmatprep.subr.bf16.mxu0 %v4930_v28  ;;  %v5017_v28 = vld [vmem:[%s7323_s1 + $0x42c] ss:$16 sps:$4 sm:$0xff]  }
  0x8f   :  { %3297 = vmatpush1.bf16.msra.mxu1 %v4931_v30  ;;  %v5015_v30 = vld [vmem:[%s7323_s1 + $0x428] ss:$16 sps:$4 sm:$0xff]  }
  0x90   :  { %3051 = vmatpush1.bf16.msra.mxu0 %v4928_v29  ;;  %3298 = vmatprep.subr.bf16.mxu1 %v4939_v32  ;;  %v5012_v29 = vld [vmem:[%s7323_s1 + $0x820] ss:$16 sps:$4 sm:$0xff]  }
  0x91   :  { %3052 = vmatprep.subr.bf16.mxu0 %v4936_v31  ;;  %v5020_v31 = vld [vmem:[%s7323_s1 + $0x844] ss:$16 sps:$4 sm:$0xff]   ;;  %v5018_v32 = vld [vmem:[%s7323_s1 + $0x840] ss:$16 sps:$4 sm:$0xff]  }
  0x93   :  { %3299 = vmatpush1.bf16.msra.mxu1 %v4937_v34  ;;  %v5026_v34 = vld [vmem:[%s7323_s1 + $0x864] ss:$16 sps:$4 sm:$0xff]  }
  0x94   :  { %3053 = vmatpush1.bf16.msra.mxu0 %v4934_v33  ;;  %3300 = vmatprep.subr.bf16.mxu1 %v4945_v37  ;;  %v5021_v33 = vld [vmem:[%s7323_s1 + $0x448] ss:$16 sps:$4 sm:$0xff]  }
  0x95   :  { %3054 = vmatprep.subr.bf16.mxu0 %v4942_v35  ;;  %v5024_v35 = vld [vmem:[%s7323_s1 + $0x860] ss:$16 sps:$4 sm:$0xff]   ;;  %v5027_v37 = vld [vmem:[%s7323_s1 + $0x468] ss:$16 sps:$4 sm:$0xff]  }
  0x97   :  { %3301 = vmatpush1.bf16.msra.mxu1 %v4943_v39  ;;  %v5035_v39 = vld [vmem:[%s7323_s1 + $0x48c] ss:$16 sps:$4 sm:$0xff]  }
  0x98   :  { %3055 = vmatpush1.bf16.msra.mxu0 %v4940_v38  ;;  %3302 = vmatprep.subr.bf16.mxu1 %v4951_v41  ;;  %v5032_v38 = vld [vmem:[%s7323_s1 + $0x884] ss:$16 sps:$4 sm:$0xff]   ;;  %v5033_v41 = vld [vmem:[%s7323_s1 + $0x488] ss:$16 sps:$4 sm:$0xff]  }
  0x99   :  { %3056 = vmatprep.subr.bf16.mxu0 %v4948_v40  ;;  %v5030_v40 = vld [vmem:[%s7323_s1 + $0x880] ss:$16 sps:$4 sm:$0xff]  }
  0x9b   :  { %3303 = vmatpush1.bf16.msra.mxu1 %v4949_v43  ;;  %v5041_v43 = vld [vmem:[%s7323_s1 + $0x4ac] ss:$16 sps:$4 sm:$0xff]  }
  0x9c   :  { %3057 = vmatpush1.bf16.msra.mxu0 %v4946_v42  ;;  %3304 = vmatprep.subr.bf16.mxu1 %v4957_v45  ;;  %v5038_v42 = vld [vmem:[%s7323_s1 + $0x8a4] ss:$16 sps:$4 sm:$0xff]   ;;  %v5039_v45 = vld [vmem:[%s7323_s1 + $0x4a8] ss:$16 sps:$4 sm:$0xff]  }
  0x9d   :  { %3058 = vmatprep.subr.bf16.mxu0 %v4954_v44  ;;  %v5036_v44 = vld [vmem:[%s7323_s1 + $0x8a0] ss:$16 sps:$4 sm:$0xff]  }
  0x9f   :  { %3305 = vmatpush1.bf16.msra.mxu1 %v4955_v47  ;;  %v5047_v47 = vld [vmem:[%s7323_s1 + $0x4cc] ss:$16 sps:$4 sm:$0xff]  }
  0xa0   :  { %3059 = vmatpush1.bf16.msra.mxu0 %v4952_v46  ;;  %3306 = vmatprep.subr.bf16.mxu1 %v4963_v49  ;;  %v5044_v46 = vld [vmem:[%s7323_s1 + $0x8c4] ss:$16 sps:$4 sm:$0xff]   ;;  %v5045_v49 = vld [vmem:[%s7323_s1 + $0x4c8] ss:$16 sps:$4 sm:$0xff]  }
  0xa1   :  { %3060 = vmatprep.subr.bf16.mxu0 %v4960_v48  ;;  %v5042_v48 = vld [vmem:[%s7323_s1 + $0x8c0] ss:$16 sps:$4 sm:$0xff]  }
  0xa3   :  { %3307 = vmatpush1.bf16.msra.mxu1 %v4961_v51  ;;  %v5053_v51 = vld [vmem:[%s7323_s1 + $0x4ec] ss:$16 sps:$4 sm:$0xff]  }
  0xa4   :  { %3061 = vmatpush1.bf16.msra.mxu0 %v4958_v50  ;;  %3308 = vmatprep.subr.bf16.mxu1 %v4969_v54  ;;  %v5050_v50 = vld [vmem:[%s7323_s1 + $0x8e4] ss:$16 sps:$4 sm:$0xff]   ;;  %v5051_v54 = vld [vmem:[%s7323_s1 + $0x4e8] ss:$16 sps:$4 sm:$0xff]  }
  0xa5   :  { %3062 = vmatprep.subr.bf16.mxu0 %v4966_v53  ;;  %v5048_v53 = vld [vmem:[%s7323_s1 + $0x8e0] ss:$16 sps:$4 sm:$0xff]  }
  0xa7   :  { %3309 = vmatpush1.bf16.msra.mxu1 %v4967_v56  ;;  %v5059_v56 = vld [vmem:[%s7323_s1 + $0x50c] ss:$16 sps:$4 sm:$0xff]  }
  0xa8   :  { %3063 = vmatpush1.bf16.msra.mxu0 %v4964_v55  ;;  %3310 = vmatprep.subr.bf16.mxu1 %v4975_v58  ;;  %v5056_v55 = vld [vmem:[%s7323_s1 + $0x904] ss:$16 sps:$4 sm:$0xff]   ;;  %v5057_v58 = vld [vmem:[%s7323_s1 + $0x508] ss:$16 sps:$4 sm:$0xff]  }
  0xa9   :  { %3064 = vmatprep.subr.bf16.mxu0 %v4972_v57  ;;  %v5054_v57 = vld [vmem:[%s7323_s1 + $0x900] ss:$16 sps:$4 sm:$0xff]  }
  0xab   :  { %3311 = vmatpush1.bf16.msra.mxu1 %v4973_v60  ;;  %v5065_v60 = vld [vmem:[%s7323_s1 + $0x52c] ss:$16 sps:$4 sm:$0xff]  }
  0xac   :  { %3065 = vmatpush1.bf16.msra.mxu0 %v4970_v59  ;;  %3312 = vmatprep.subr.bf16.mxu1 %v4981_v62  ;;  %v5062_v59 = vld [vmem:[%s7323_s1 + $0x924] ss:$16 sps:$4 sm:$0xff]   ;;  %v5063_v62 = vld [vmem:[%s7323_s1 + $0x528] ss:$16 sps:$4 sm:$0xff]  }
  0xad   :  { %3066 = vmatprep.subr.bf16.mxu0 %v4978_v61  ;;  %v5060_v61 = vld [vmem:[%s7323_s1 + $0x920] ss:$16 sps:$4 sm:$0xff]  }
  0xaf   :  { %3313 = vmatpush1.bf16.msra.mxu1 %v4979_v0  ;;  %v5071_v0 = vld [vmem:[%s7323_s1 + $0x54c] ss:$16 sps:$4 sm:$0xff]  }
  0xb0   :  { %3067 = vmatpush1.bf16.msra.mxu0 %v4976_v63  ;;  %3314 = vmatprep.subr.bf16.mxu1 %v4987_v2  ;;  %v5068_v63 = vld [vmem:[%s7323_s1 + $0x944] ss:$16 sps:$4 sm:$0xff]   ;;  %v5069_v2 = vld [vmem:[%s7323_s1 + $0x548] ss:$16 sps:$4 sm:$0xff]  }
  0xb1   :  { %3068 = vmatprep.subr.bf16.mxu0 %v4984_v1  ;;  %v5066_v1 = vld [vmem:[%s7323_s1 + $0x940] ss:$16 sps:$4 sm:$0xff]  }
  0xb3   :  { %3315 = vmatpush1.bf16.msra.mxu1 %v4985_v4  ;;  %v5077_v4 = vld [vmem:[%s7323_s1 + $0x56c] ss:$16 sps:$4 sm:$0xff]  }
  0xb4   :  { %3069 = vmatpush1.bf16.msra.mxu0 %v4982_v3  ;;  %3316 = vmatprep.subr.bf16.mxu1 %v4993_v6  ;;  %v5074_v3 = vld [vmem:[%s7323_s1 + $0x964] ss:$16 sps:$4 sm:$0xff]   ;;  %v5075_v6 = vld [vmem:[%s7323_s1 + $0x568] ss:$16 sps:$4 sm:$0xff]  }
  0xb5   :  { %3070 = vmatprep.subr.bf16.mxu0 %v4990_v5  ;;  %v5072_v5 = vld [vmem:[%s7323_s1 + $0x960] ss:$16 sps:$4 sm:$0xff]  }
  0xb7   :  { %3317 = vmatpush1.bf16.msra.mxu1 %v4991_v9  ;;  %v5083_v9 = vld [vmem:[%s7323_s1 + $0x58c] ss:$16 sps:$4 sm:$0xff]  }
  0xb8   :  { %3071 = vmatpush1.bf16.msra.mxu0 %v4988_v7  ;;  %3318 = vmatprep.subr.bf16.mxu1 %v4999_v12  ;;  %v5080_v7 = vld [vmem:[%s7323_s1 + $0x984] ss:$16 sps:$4 sm:$0xff]   ;;  %v5081_v12 = vld [vmem:[%s7323_s1 + $0x588] ss:$16 sps:$4 sm:$0xff]  }
  0xb9   :  { %3072 = vmatprep.subr.bf16.mxu0 %v4996_v10  ;;  %v5078_v10 = vld [vmem:[%s7323_s1 + $0x980] ss:$16 sps:$4 sm:$0xff]  }
  0xbb   :  { %3319 = vmatpush1.bf16.msra.mxu1 %v4997_v14  ;;  %v5089_v14 = vld [vmem:[%s7323_s1 + $0x5ac] ss:$16 sps:$4 sm:$0xff]  }
  0xbc   :  { %3073 = vmatpush1.bf16.msra.mxu0 %v4994_v13  ;;  %3320 = vmatprep.subr.bf16.mxu1 %v5005_v17  ;;  %v5086_v13 = vld [vmem:[%s7323_s1 + $0x9a4] ss:$16 sps:$4 sm:$0xff]   ;;  %v5087_v17 = vld [vmem:[%s7323_s1 + $0x5a8] ss:$16 sps:$4 sm:$0xff]  }
  0xbd   :  { %3074 = vmatprep.subr.bf16.mxu0 %v5002_v15  ;;  %v5084_v15 = vld [vmem:[%s7323_s1 + $0x9a0] ss:$16 sps:$4 sm:$0xff]  }
  0xbf   :  { %3321 = vmatpush1.bf16.msra.mxu1 %v5003_v19  ;;  %v5095_v19 = vld [vmem:[%s7323_s1 + $0x5cc] ss:$16 sps:$4 sm:$0xff]  }
  0xc0   :  { %3075 = vmatpush1.bf16.msra.mxu0 %v5000_v18  ;;  %3331 = vmatprep.subr.bf16.mxu1 %v5011_v22  ;;  %v5092_v18 = vld [vmem:[%s7323_s1 + $0x9c4] ss:$16 sps:$4 sm:$0xff]  }
  0xc1   :  { %3085 = vmatprep.subr.bf16.mxu0 %v5008_v20  ;;  %v5090_v20 = vld [vmem:[%s7323_s1 + $0x9c0] ss:$16 sps:$4 sm:$0xff]   ;;  %v5098_v22 = vld [vmem:[%s7323_s1 + $0x9e4] ss:$16 sps:$4 sm:$0xff]  }
  0xc2   :  { %3323 = vmatmul.mubr.bf16.vlgmr.msra.gmra.mrb[4].mxu1 %v5786_v11  ;;  %v5023_v11 = vld [vmem:[%s7323_s1 + $0x44c] ss:$16 sps:$4 sm:$0xff]  }
  0xc3   :  { %3077 = vmatmul.mubr.bf16.vlgmr.msra.gmra.mrb[0].mxu0 %v6195_v25  ;;  %3332 = vmatpush1.bf16.msra.mxu1 %v5009_v26  ;;  %v5099_v26 = vld [vmem:[%s7323_s1 + $0x5e8] ss:$16 sps:$4 sm:$0xff]  }
  0xc4   :  { %3086 = vmatpush1.bf16.msra.mxu0 %v5006_v24  ;;  %3333 = vmatprep.subr.bf16.mxu1 %v5017_v28  ;;  %v5101_v24 = vld [vmem:[%s7323_s1 + $0x5ec] ss:$16 sps:$4 sm:$0xff]   ;;  %v5104_v28 = vld [vmem:[%s7323_s1 + $0xa04] ss:$16 sps:$4 sm:$0xff]  }
  0xc5   :  { %3087 = vmatprep.subr.bf16.mxu0 %v5014_v27  ;;  %3117 = vmatprep.mubr.bf16.mxu0 %v6209_v52  ;;  %v37_v27 = vld [vmem:[%s7324_s0 + $0x40] sm:$0xff] }
  0xc6   :  { %3363 = vmatprep.mubr.bf16.mxu1 %v5863_v36  ;;  %v5029_v36 = vld [vmem:[%s7323_s1 + $0x46c] ss:$16 sps:$4 sm:$0xff]  }
  0xc7   :  { %3334 = vmatpush1.bf16.msra.mxu1 %v5015_v30  ;;  %v5102_v30 = vld [vmem:[%s7323_s1 + $0xa00] ss:$16 sps:$4 sm:$0xff]  }
  0xc8   :  { %3088 = vmatpush1.bf16.msra.mxu0 %v5012_v29  ;;  %3335 = vmatprep.subr.bf16.mxu1 %v5023_v11  ;;  %v5107_v29 = vld [vmem:[%s7323_s1 + $0x60c] ss:$16 sps:$4 sm:$0xff]  }
  0xc9   :  { %3089 = vmatprep.subr.bf16.mxu0 %v5020_v31  ;;  %v6401_v31 = vpack.c.bf16 %v37_v27, %v37_v27  ;;  %v40_v11 = vld [vmem:[%s7324_s0 + $0x58] sm:$0xff] }
  0xca   :  { %v5185_v27 = vld [vmem:[%s7323_s1 + $0x7ac] ss:$16 sps:$4 sm:$0xff]  }
  0xcb   :  { %3336 = vmatpush1.bf16.msra.mxu1 %v5021_v33  ;;  %v5110_v33 = vld [vmem:[%s7323_s1 + $0xa24] ss:$16 sps:$4 sm:$0xff]  }
  0xcc   :  { %3090 = vmatpush1.bf16.msra.mxu0 %v5018_v32  ;;  %3337 = vmatprep.subr.bf16.mxu1 %v5029_v36  ;;  %v5105_v32 = vld [vmem:[%s7323_s1 + $0x608] ss:$16 sps:$4 sm:$0xff]   ;;  %v6415_v36 = vpack.c.bf16 %v40_v11, %v40_v11  ;;  %v5191_v11 = vld [vmem:[%s7323_s1 + $0x7cc] ss:$16 sps:$4 sm:$0xff]  }
  0xcd   :  { %3091 = vmatprep.subr.bf16.mxu0 %v5026_v34  ;;  %v5113_v34 = vld [vmem:[%s7323_s1 + $0x62c] ss:$16 sps:$4 sm:$0xff]  }
  0xcf   :  { %3338 = vmatpush1.bf16.msra.mxu1 %v5027_v37  ;;  %v5111_v37 = vld [vmem:[%s7323_s1 + $0x628] ss:$16 sps:$4 sm:$0xff]  }
  0xd0   :  { %3092 = vmatpush1.bf16.msra.mxu0 %v5024_v35  ;;  %3339 = vmatprep.subr.bf16.mxu1 %v5035_v39  ;;  %v5108_v35 = vld [vmem:[%s7323_s1 + $0xa20] ss:$16 sps:$4 sm:$0xff]  }
  0xd1   :  { %3093 = vmatprep.subr.bf16.mxu0 %v5032_v38  ;;  %v5116_v38 = vld [vmem:[%s7323_s1 + $0xa44] ss:$16 sps:$4 sm:$0xff]   ;;  %v5114_v39 = vld [vmem:[%s7323_s1 + $0xa40] ss:$16 sps:$4 sm:$0xff]  }
  0xd3   :  { %3340 = vmatpush1.bf16.msra.mxu1 %v5033_v41  ;;  %v5122_v41 = vld [vmem:[%s7323_s1 + $0xa64] ss:$16 sps:$4 sm:$0xff]  }
  0xd4   :  { %3094 = vmatpush1.bf16.msra.mxu0 %v5030_v40  ;;  %3341 = vmatprep.subr.bf16.mxu1 %v5041_v43  ;;  %v5117_v40 = vld [vmem:[%s7323_s1 + $0x648] ss:$16 sps:$4 sm:$0xff]  }
  0xd5   :  { %3095 = vmatprep.subr.bf16.mxu0 %v5038_v42  ;;  %v5120_v42 = vld [vmem:[%s7323_s1 + $0xa60] ss:$16 sps:$4 sm:$0xff]   ;;  %v5123_v43 = vld [vmem:[%s7323_s1 + $0x668] ss:$16 sps:$4 sm:$0xff]  }
  0xd7   :  { %3342 = vmatpush1.bf16.msra.mxu1 %v5039_v45  ;;  %v5131_v45 = vld [vmem:[%s7323_s1 + $0x68c] ss:$16 sps:$4 sm:$0xff]  }
  0xd8   :  { %3096 = vmatpush1.bf16.msra.mxu0 %v5036_v44  ;;  %3343 = vmatprep.subr.bf16.mxu1 %v5047_v47  ;;  %v5128_v44 = vld [vmem:[%s7323_s1 + $0xa84] ss:$16 sps:$4 sm:$0xff]   ;;  %v5129_v47 = vld [vmem:[%s7323_s1 + $0x688] ss:$16 sps:$4 sm:$0xff]  }
  0xd9   :  { %3097 = vmatprep.subr.bf16.mxu0 %v5044_v46  ;;  %v5126_v46 = vld [vmem:[%s7323_s1 + $0xa80] ss:$16 sps:$4 sm:$0xff]  }
  0xdb   :  { %3344 = vmatpush1.bf16.msra.mxu1 %v5045_v49  ;;  %v5137_v49 = vld [vmem:[%s7323_s1 + $0x6ac] ss:$16 sps:$4 sm:$0xff]  }
  0xdc   :  { %3098 = vmatpush1.bf16.msra.mxu0 %v5042_v48  ;;  %3345 = vmatprep.subr.bf16.mxu1 %v5053_v51  ;;  %v5134_v48 = vld [vmem:[%s7323_s1 + $0xaa4] ss:$16 sps:$4 sm:$0xff]   ;;  %v5135_v51 = vld [vmem:[%s7323_s1 + $0x6a8] ss:$16 sps:$4 sm:$0xff]  }
  0xdd   :  { %3099 = vmatprep.subr.bf16.mxu0 %v5050_v50  ;;  %v5132_v50 = vld [vmem:[%s7323_s1 + $0xaa0] ss:$16 sps:$4 sm:$0xff]  }
  0xdf   :  { %3346 = vmatpush1.bf16.msra.mxu1 %v5051_v54  ;;  %v5143_v54 = vld [vmem:[%s7323_s1 + $0x6cc] ss:$16 sps:$4 sm:$0xff]  }
  0xe0   :  { %3100 = vmatpush1.bf16.msra.mxu0 %v5048_v53  ;;  %3347 = vmatprep.subr.bf16.mxu1 %v5059_v56  ;;  %v5140_v53 = vld [vmem:[%s7323_s1 + $0xac4] ss:$16 sps:$4 sm:$0xff]   ;;  %v5138_v56 = vld [vmem:[%s7323_s1 + $0xac0] ss:$16 sps:$4 sm:$0xff]  }
  0xe1   :  { %3101 = vmatprep.subr.bf16.mxu0 %v5056_v55 }
  0xe3   :  { %3348 = vmatpush1.bf16.msra.mxu1 %v5057_v58 }
  0xe4   :  { %3102 = vmatpush1.bf16.msra.mxu0 %v5054_v57  ;;  %3349 = vmatprep.subr.bf16.mxu1 %v5065_v60  ;;  %v5141_v57 = vld [vmem:[%s7323_s1 + $0x6c8] ss:$16 sps:$4 sm:$0xff]   ;;  %v5146_v60 = vld [vmem:[%s7323_s1 + $0xae4] ss:$16 sps:$4 sm:$0xff]  }
  0xe5   :  { %3103 = vmatprep.subr.bf16.mxu0 %v5062_v59 }
  0xe7   :  { %3350 = vmatpush1.bf16.msra.mxu1 %v5063_v62  ;;  %v5149_v62 = vld [vmem:[%s7323_s1 + $0x6ec] ss:$16 sps:$4 sm:$0xff]  }
  0xe8   :  { %3104 = vmatpush1.bf16.msra.mxu0 %v5060_v61  ;;  %3351 = vmatprep.subr.bf16.mxu1 %v5071_v0  ;;  %v5147_v0 = vld [vmem:[%s7323_s1 + $0x6e8] ss:$16 sps:$4 sm:$0xff]  }
  0xe9   :  { %3105 = vmatprep.subr.bf16.mxu0 %v5068_v63  ;;  %v5144_v63 = vld [vmem:[%s7323_s1 + $0xae0] ss:$16 sps:$4 sm:$0xff]  }
  0xeb   :  { %3352 = vmatpush1.bf16.msra.mxu1 %v5069_v2  ;;  %v5152_v2 = vld [vmem:[%s7323_s1 + $0xb04] ss:$16 sps:$4 sm:$0xff]  }
  0xec   :  { %3106 = vmatpush1.bf16.msra.mxu0 %v5066_v1  ;;  %3353 = vmatprep.subr.bf16.mxu1 %v5077_v4  ;;  %v5520_v1 = vmov 0   ;;  %v5150_v4 = vld [vmem:[%s7323_s1 + $0xb00] ss:$16 sps:$4 sm:$0xff]  }
  0xed   :  { %3107 = vmatprep.subr.bf16.mxu0 %v5074_v3  ;;  %4717 = vset.pattern.permute.xlu0 %v5520_v1  ;;  %v5155_v3 = vld [vmem:[%s7323_s1 + $0x70c] ss:$16 sps:$4 sm:$0xff]  }
  0xef   :  { %3354 = vmatpush1.bf16.msra.mxu1 %v5075_v6  ;;  %v5158_v6 = vld [vmem:[%s7323_s1 + $0xb24] ss:$16 sps:$4 sm:$0xff]  }
  0xf0   :  { %3108 = vmatpush1.bf16.msra.mxu0 %v5072_v5  ;;  %3355 = vmatprep.subr.bf16.mxu1 %v5083_v9  ;;  %v5153_v5 = vld [vmem:[%s7323_s1 + $0x708] ss:$16 sps:$4 sm:$0xff]   ;;  %v5156_v9 = vld [vmem:[%s7323_s1 + $0xb20] ss:$16 sps:$4 sm:$0xff]  }
  0xf1   :  { %3109 = vmatprep.subr.bf16.mxu0 %v5080_v7  ;;  %v5161_v7 = vld [vmem:[%s7323_s1 + $0x72c] ss:$16 sps:$4 sm:$0xff]  }
  0xf3   :  { %3356 = vmatpush1.bf16.msra.mxu1 %v5081_v12  ;;  %v5164_v12 = vld [vmem:[%s7323_s1 + $0xb44] ss:$16 sps:$4 sm:$0xff]  }
  0xf4   :  { %3110 = vmatpush1.bf16.msra.mxu0 %v5078_v10  ;;  %3357 = vmatprep.subr.bf16.mxu1 %v5089_v14  ;;  %v5159_v10 = vld [vmem:[%s7323_s1 + $0x728] ss:$16 sps:$4 sm:$0xff]   ;;  %v5162_v14 = vld [vmem:[%s7323_s1 + $0xb40] ss:$16 sps:$4 sm:$0xff]  }
  0xf5   :  { %3111 = vmatprep.subr.bf16.mxu0 %v5086_v13  ;;  %v5167_v13 = vld [vmem:[%s7323_s1 + $0x74c] ss:$16 sps:$4 sm:$0xff]  }
  0xf7   :  { %3358 = vmatpush1.bf16.msra.mxu1 %v5087_v17  ;;  %v5170_v17 = vld [vmem:[%s7323_s1 + $0xb64] ss:$16 sps:$4 sm:$0xff]  }
  0xf8   :  { %3112 = vmatpush1.bf16.msra.mxu0 %v5084_v15  ;;  %3359 = vmatprep.subr.bf16.mxu1 %v5095_v19  ;;  %v5165_v15 = vld [vmem:[%s7323_s1 + $0x748] ss:$16 sps:$4 sm:$0xff]   ;;  %v5168_v19 = vld [vmem:[%s7323_s1 + $0xb60] ss:$16 sps:$4 sm:$0xff]  }
  0xf9   :  { %3113 = vmatprep.subr.bf16.mxu0 %v5092_v18  ;;  %v5173_v18 = vld [vmem:[%s7323_s1 + $0x76c] ss:$16 sps:$4 sm:$0xff]  }
  0xfb   :  { %3360 = vmatpush1.bf16.msra.mxu1 %v5093_v21  ;;  %v5176_v21 = vld [vmem:[%s7323_s1 + $0xb84] ss:$16 sps:$4 sm:$0xff]  }
  0xfc   :  { %3114 = vmatpush1.bf16.msra.mxu0 %v5090_v20  ;;  %3361 = vmatprep.subr.bf16.mxu1 %v5101_v24  ;;  %v5171_v20 = vld [vmem:[%s7323_s1 + $0x768] ss:$16 sps:$4 sm:$0xff]   ;;  %v5174_v24 = vld [vmem:[%s7323_s1 + $0xb80] ss:$16 sps:$4 sm:$0xff]  }
  0xfd   :  { %3115 = vmatprep.subr.bf16.mxu0 %v5098_v22  ;;  %v5179_v22 = vld [vmem:[%s7323_s1 + $0x78c] ss:$16 sps:$4 sm:$0xff]  }
  0xff   :  { %3362 = vmatpush1.bf16.msra.mxu1 %v5099_v26  ;;  %v5182_v26 = vld [vmem:[%s7323_s1 + $0xba4] ss:$16 sps:$4 sm:$0xff]  }
 0x100   :  { %3116 = vmatpush1.bf16.msra.mxu0 %v5096_v8  ;;  %3372 = vmatprep.subr.bf16.mxu1 %v5107_v29  ;;  %v5177_v8 = vld [vmem:[%s7323_s1 + $0x788] ss:$16 sps:$4 sm:$0xff]  }
 0x101   :  { %3126 = vmatprep.subr.bf16.mxu0 %v5104_v28  ;;  %v5180_v28 = vld [vmem:[%s7323_s1 + $0xba0] ss:$16 sps:$4 sm:$0xff]   ;;  %v5183_v29 = vld [vmem:[%s7323_s1 + $0x7a8] ss:$16 sps:$4 sm:$0xff]  }
 0x102   :  { %3364 = vmatmul.mubr.bf16.vlgmr.msra.gmra.mrb[4].mxu1 %v5986_v16  ;;  %v5119_v16 = vld [vmem:[%s7323_s1 + $0x64c] ss:$16 sps:$4 sm:$0xff]  }
 0x103   :  { %3118 = vmatmul.mubr.bf16.vlgmr.msra.gmra.mrb[0].mxu0 %v6401_v31  ;;  %3373 = vmatpush1.bf16.msra.mxu1 %v5105_v32  ;;  %v5186_v32 = vld [vmem:[%s7323_s1 + $0xbc0] ss:$16 sps:$4 sm:$0xff]  }
 0x104   :  { %3127 = vmatpush1.bf16.msra.mxu0 %v5102_v30  ;;  %3374 = vmatprep.subr.bf16.mxu1 %v5113_v34  ;;  %v5188_v30 = vld [vmem:[%s7323_s1 + $0xbc4] ss:$16 sps:$4 sm:$0xff]  }
 0x105   :  { %3128 = vmatprep.subr.bf16.mxu0 %v5110_v33  ;;  %3158 = vmatprep.mubr.bf16.mxu0 %v6415_v36  ;;  %v5189_v33 = vld [vmem:[%s7323_s1 + $0x7c8] ss:$16 sps:$4 sm:$0xff]   ;;  %v5194_v34 = vld [vmem:[%s7323_s1 + $0xbe4] ss:$16 sps:$4 sm:$0xff]  }
 0x106   :  { %3404 = vmatprep.mubr.bf16.mxu1 %v6008_v23  ;;  %v5125_v23 = vld [vmem:[%s7323_s1 + $0x66c] ss:$16 sps:$4 sm:$0xff]  }
 0x107   :  { %3375 = vmatpush1.bf16.msra.mxu1 %v5111_v37  ;;  %v5192_v37 = vld [vmem:[%s7323_s1 + $0xbe0] ss:$16 sps:$4 sm:$0xff]  }
 0x108   :  { %3129 = vmatpush1.bf16.msra.mxu0 %v5108_v35  ;;  %3376 = vmatprep.subr.bf16.mxu1 %v5119_v16  ;;  %v5197_v35 = vld [vmem:[%s7323_s1 + $0x7ec] ss:$16 sps:$4 sm:$0xff]   ;;  %v39_v16 = vld [vmem:[%s7324_s0 + $0x50] sm:$0xff] }
 0x109   :  { %3130 = vmatprep.subr.bf16.mxu0 %v5116_v38  ;;  %v5195_v38 = vld [vmem:[%s7323_s1 + $0x7e8] ss:$16 sps:$4 sm:$0xff]  }
 0x10b   :  { %3377 = vmatpush1.bf16.msra.mxu1 %v5117_v40  ;;  %v5203_v40 = vld [vmem:[%s7323_s1 + $0x80c] ss:$16 sps:$4 sm:$0xff]  }
 0x10c   :  { %3131 = vmatpush1.bf16.msra.mxu0 %v5114_v39  ;;  %3378 = vmatprep.subr.bf16.mxu1 %v5125_v23  ;;  %v5200_v39 = vld [vmem:[%s7323_s1 + $0xc04] ss:$16 sps:$4 sm:$0xff]   ;;  %v42_v23 = vld [vmem:[%s7324_s0 + $0x68] sm:$0xff] }
 0x10d   :  { %3132 = vmatprep.subr.bf16.mxu0 %v5122_v41  ;;  %v6609_v41 = vpack.c.bf16 %v39_v16, %v39_v16  ;;  %v5279_v16 = vld [vmem:[%s7323_s1 + $0x9a8] ss:$16 sps:$4 sm:$0xff]  }
 0x10f   :  { %3379 = vmatpush1.bf16.msra.mxu1 %v5123_v43  ;;  %v5201_v43 = vld [vmem:[%s7323_s1 + $0x808] ss:$16 sps:$4 sm:$0xff]  }
 0x110   :  { %3133 = vmatpush1.bf16.msra.mxu0 %v5120_v42  ;;  %3380 = vmatprep.subr.bf16.mxu1 %v5131_v45  ;;  %v5198_v42 = vld [vmem:[%s7323_s1 + $0xc00] ss:$16 sps:$4 sm:$0xff]   ;;  %v5209_v45 = vld [vmem:[%s7323_s1 + $0x82c] ss:$16 sps:$4 sm:$0xff]  }
 0x111   :  { %3134 = vmatprep.subr.bf16.mxu0 %v5128_v44  ;;  %v5206_v44 = vld [vmem:[%s7323_s1 + $0xc24] ss:$16 sps:$4 sm:$0xff]  }
 0x113   :  { %3381 = vmatpush1.bf16.msra.mxu1 %v5129_v47  ;;  %v5204_v47 = vld [vmem:[%s7323_s1 + $0xc20] ss:$16 sps:$4 sm:$0xff]  }
 0x114   :  { %3135 = vmatpush1.bf16.msra.mxu0 %v5126_v46  ;;  %3382 = vmatprep.subr.bf16.mxu1 %v5137_v49  ;;  %v6626_v46 = vpack.c.bf16 %v42_v23, %v42_v23  ;;  %v5212_v49 = vld [vmem:[%s7323_s1 + $0xc44] ss:$16 sps:$4 sm:$0xff]   ;;  %v5282_v23 = vld [vmem:[%s7323_s1 + $0xdc0] ss:$16 sps:$4 sm:$0xff]  }
 0x115   :  { %3136 = vmatprep.subr.bf16.mxu0 %v5134_v48  ;;  %v6481_v55 = vpop.f32.mrb[0].mxu1  ;;  %v5207_v48 = vld [vmem:[%s7323_s1 + $0x828] ss:$16 sps:$4 sm:$0xff]  }
 0x116   :  { %v6489_v58 = vpop.f32.mrb[1].mxu1 }
 0x117   :  { %v2959_v59 = vpop.f32.mrb[2].mxu1  ;;  %3383 = vmatpush1.bf16.msra.mxu1 %v5135_v51  ;;  %v5213_v51 = vld [vmem:[%s7323_s1 + $0x848] ss:$16 sps:$4 sm:$0xff]  }
 0x118   :  { %3137 = vmatpush1.bf16.msra.mxu0 %v5132_v50  ;;  %v2960_v61 = vpop.f32.mrb[3].mxu1  ;;  %3384 = vmatprep.subr.bf16.mxu1 %v5143_v54  ;;  %v5210_v50 = vld [vmem:[%s7323_s1 + $0xc40] ss:$16 sps:$4 sm:$0xff]   ;;  %v5227_v59 = vld [vmem:[%s7323_s1 + $0x88c] ss:$16 sps:$4 sm:$0xff]  }
 0x119   :  { %3138 = vmatprep.subr.bf16.mxu0 %v5140_v53  ;;  %v5218_v53 = vld [vmem:[%s7323_s1 + $0xc64] ss:$16 sps:$4 sm:$0xff]   ;;  %v5216_v54 = vld [vmem:[%s7323_s1 + $0xc60] ss:$16 sps:$4 sm:$0xff]   ;;  %v5225_v61 = vld [vmem:[%s7323_s1 + $0x888] ss:$16 sps:$4 sm:$0xff]  }
 0x11b   :  { %3385 = vmatpush1.bf16.msra.mxu1 %v5141_v57  ;;  %v5224_v57 = vld [vmem:[%s7323_s1 + $0xc84] ss:$16 sps:$4 sm:$0xff]  }
 0x11c   :  { %3139 = vmatpush1.bf16.msra.mxu0 %v5138_v56  ;;  %3386 = vmatprep.subr.bf16.mxu1 %v5149_v62  ;;  %v5219_v56 = vld [vmem:[%s7323_s1 + $0x868] ss:$16 sps:$4 sm:$0xff]   ;;  %v5230_v62 = vld [vmem:[%s7323_s1 + $0xca4] ss:$16 sps:$4 sm:$0xff]  }
 0x11d   :  { %3140 = vmatprep.subr.bf16.mxu0 %v5146_v60  ;;  %v5222_v60 = vld [vmem:[%s7323_s1 + $0xc80] ss:$16 sps:$4 sm:$0xff]  }
 0x11f   :  { %3387 = vmatpush1.bf16.msra.mxu1 %v5147_v0  ;;  %v5228_v0 = vld [vmem:[%s7323_s1 + $0xca0] ss:$16 sps:$4 sm:$0xff]  }
 0x120   :  { %3141 = vmatpush1.bf16.msra.mxu0 %v5144_v63  ;;  %3388 = vmatprep.subr.bf16.mxu1 %v5155_v3  ;;  %v5233_v63 = vld [vmem:[%s7323_s1 + $0x8ac] ss:$16 sps:$4 sm:$0xff]   ;;  %v5236_v3 = vld [vmem:[%s7323_s1 + $0xcc4] ss:$16 sps:$4 sm:$0xff]  }
 0x121   :  { %3142 = vmatprep.subr.bf16.mxu0 %v5152_v2  ;;  %v5231_v2 = vld [vmem:[%s7323_s1 + $0x8a8] ss:$16 sps:$4 sm:$0xff]  }
 0x123   :  { %3389 = vmatpush1.bf16.msra.mxu1 %v5153_v5  ;;  %v5234_v5 = vld [vmem:[%s7323_s1 + $0xcc0] ss:$16 sps:$4 sm:$0xff]  }
 0x124   :  { %3143 = vmatpush1.bf16.msra.mxu0 %v5150_v4  ;;  %3390 = vmatprep.subr.bf16.mxu1 %v5161_v7  ;;  %v5239_v4 = vld [vmem:[%s7323_s1 + $0x8cc] ss:$16 sps:$4 sm:$0xff]   ;;  %v5242_v7 = vld [vmem:[%s7323_s1 + $0xce4] ss:$16 sps:$4 sm:$0xff]  }
 0x125   :  { %3144 = vmatprep.subr.bf16.mxu0 %v5158_v6  ;;  %v5237_v6 = vld [vmem:[%s7323_s1 + $0x8c8] ss:$16 sps:$4 sm:$0xff]  }
 0x127   :  { %3391 = vmatpush1.bf16.msra.mxu1 %v5159_v10  ;;  %v5240_v10 = vld [vmem:[%s7323_s1 + $0xce0] ss:$16 sps:$4 sm:$0xff]  }
 0x128   :  { %3145 = vmatpush1.bf16.msra.mxu0 %v5156_v9  ;;  %3392 = vmatprep.subr.bf16.mxu1 %v5167_v13  ;;  %v5245_v9 = vld [vmem:[%s7323_s1 + $0x8ec] ss:$16 sps:$4 sm:$0xff]   ;;  %v5248_v13 = vld [vmem:[%s7323_s1 + $0xd04] ss:$16 sps:$4 sm:$0xff]  }
 0x129   :  { %3146 = vmatprep.subr.bf16.mxu0 %v5164_v12  ;;  %v5243_v12 = vld [vmem:[%s7323_s1 + $0x8e8] ss:$16 sps:$4 sm:$0xff]  }
 0x12b   :  { %3393 = vmatpush1.bf16.msra.mxu1 %v5165_v15  ;;  %v5246_v15 = vld [vmem:[%s7323_s1 + $0xd00] ss:$16 sps:$4 sm:$0xff]  }
 0x12c   :  { %3147 = vmatpush1.bf16.msra.mxu0 %v5162_v14  ;;  %3394 = vmatprep.subr.bf16.mxu1 %v5173_v18  ;;  %v5251_v14 = vld [vmem:[%s7323_s1 + $0x90c] ss:$16 sps:$4 sm:$0xff]   ;;  %v5254_v18 = vld [vmem:[%s7323_s1 + $0xd24] ss:$16 sps:$4 sm:$0xff]  }
 0x12d   :  { %3148 = vmatprep.subr.bf16.mxu0 %v5170_v17  ;;  %v5249_v17 = vld [vmem:[%s7323_s1 + $0x908] ss:$16 sps:$4 sm:$0xff]  }
 0x12f   :  { %3395 = vmatpush1.bf16.msra.mxu1 %v5171_v20  ;;  %v5252_v20 = vld [vmem:[%s7323_s1 + $0xd20] ss:$16 sps:$4 sm:$0xff]  }
 0x130   :  { %3149 = vmatpush1.bf16.msra.mxu0 %v5168_v19  ;;  %3396 = vmatprep.subr.bf16.mxu1 %v5179_v22  ;;  %v5257_v19 = vld [vmem:[%s7323_s1 + $0x92c] ss:$16 sps:$4 sm:$0xff]   ;;  %v5260_v22 = vld [vmem:[%s7323_s1 + $0xd44] ss:$16 sps:$4 sm:$0xff]  }
 0x131   :  { %3150 = vmatprep.subr.bf16.mxu0 %v5176_v21  ;;  %v5255_v21 = vld [vmem:[%s7323_s1 + $0x928] ss:$16 sps:$4 sm:$0xff]  }
 0x133   :  { %3397 = vmatpush1.bf16.msra.mxu1 %v5177_v8  ;;  %v5258_v8 = vld [vmem:[%s7323_s1 + $0xd40] ss:$16 sps:$4 sm:$0xff]  }
 0x134   :  { %3151 = vmatpush1.bf16.msra.mxu0 %v5174_v24  ;;  %3398 = vmatprep.subr.bf16.mxu1 %v5185_v27  ;;  %v5263_v24 = vld [vmem:[%s7323_s1 + $0x94c] ss:$16 sps:$4 sm:$0xff]   ;;  %v5266_v27 = vld [vmem:[%s7323_s1 + $0xd64] ss:$16 sps:$4 sm:$0xff]  }
 0x135   :  { %3152 = vmatprep.subr.bf16.mxu0 %v5182_v26  ;;  %v5261_v26 = vld [vmem:[%s7323_s1 + $0x948] ss:$16 sps:$4 sm:$0xff]  }
 0x137   :  { %3399 = vmatpush1.bf16.msra.mxu1 %v5183_v29  ;;  %v5264_v29 = vld [vmem:[%s7323_s1 + $0xd60] ss:$16 sps:$4 sm:$0xff]  }
 0x138   :  { %3153 = vmatpush1.bf16.msra.mxu0 %v5180_v28  ;;  %3400 = vmatprep.subr.bf16.mxu1 %v5191_v11  ;;  %v5269_v28 = vld [vmem:[%s7323_s1 + $0x96c] ss:$16 sps:$4 sm:$0xff]   ;;  %v5272_v11 = vld [vmem:[%s7323_s1 + $0xd84] ss:$16 sps:$4 sm:$0xff]  }
 0x139   :  { %3154 = vmatprep.subr.bf16.mxu0 %v5188_v30  ;;  %v5267_v30 = vld [vmem:[%s7323_s1 + $0x968] ss:$16 sps:$4 sm:$0xff]  }
 0x13b   :  { %3401 = vmatpush1.bf16.msra.mxu1 %v5189_v33  ;;  %v5270_v33 = vld [vmem:[%s7323_s1 + $0xd80] ss:$16 sps:$4 sm:$0xff]  }
 0x13c   :  { %3155 = vmatpush1.bf16.msra.mxu0 %v5186_v32  ;;  %3402 = vmatprep.subr.bf16.mxu1 %v5197_v35  ;;  %v5275_v32 = vld [vmem:[%s7323_s1 + $0x98c] ss:$16 sps:$4 sm:$0xff]   ;;  %v5278_v35 = vld [vmem:[%s7323_s1 + $0xda4] ss:$16 sps:$4 sm:$0xff]  }
 0x13d   :  { %3156 = vmatprep.subr.bf16.mxu0 %v5194_v34  ;;  %v5273_v34 = vld [vmem:[%s7323_s1 + $0x988] ss:$16 sps:$4 sm:$0xff]  }
 0x13f   :  { %3403 = vmatpush1.bf16.msra.mxu1 %v5195_v38  ;;  %v5276_v38 = vld [vmem:[%s7323_s1 + $0xda0] ss:$16 sps:$4 sm:$0xff]  }
 0x140   :  { %3157 = vmatpush1.bf16.msra.mxu0 %v5192_v37  ;;  %3413 = vmatprep.subr.bf16.mxu1 %v5203_v40  ;;  %v5281_v37 = vld [vmem:[%s7323_s1 + $0x9ac] ss:$16 sps:$4 sm:$0xff]  }
 0x141   :  { %3167 = vmatprep.subr.bf16.mxu0 %v5200_v39  ;;  %v5284_v39 = vld [vmem:[%s7323_s1 + $0xdc4] ss:$16 sps:$4 sm:$0xff]   ;;  %v5287_v40 = vld [vmem:[%s7323_s1 + $0x9cc] ss:$16 sps:$4 sm:$0xff]  }
 0x142   :  { %3405 = vmatmul.mubr.bf16.vlgmr.msra.gmra.mrb[4].mxu1 %v6195_v25  ;;  %v5215_v25 = vld [vmem:[%s7323_s1 + $0x84c] ss:$16 sps:$4 sm:$0xff]  }
 0x143   :  { %3159 = vmatmul.mubr.bf16.vlgmr.msra.gmra.mrb[0].mxu0 %v6609_v41  ;;  %3414 = vmatpush1.bf16.msra.mxu1 %v5201_v43  ;;  %v5290_v43 = vld [vmem:[%s7323_s1 + $0xde4] ss:$16 sps:$4 sm:$0xff]  }
 0x144   :  { %3168 = vmatpush1.bf16.msra.mxu0 %v5198_v42  ;;  %3415 = vmatprep.subr.bf16.mxu1 %v5209_v45  ;;  %v5285_v42 = vld [vmem:[%s7323_s1 + $0x9c8] ss:$16 sps:$4 sm:$0xff]   ;;  %v5288_v45 = vld [vmem:[%s7323_s1 + $0xde0] ss:$16 sps:$4 sm:$0xff]  }
 0x145   :  { %3169 = vmatprep.subr.bf16.mxu0 %v5206_v44  ;;  %3199 = vmatprep.mubr.bf16.mxu0 %v6626_v46  ;;  %v5293_v44 = vld [vmem:[%s7323_s1 + $0x9ec] ss:$16 sps:$4 sm:$0xff]  }
 0x146   :  { %3445 = vmatprep.mubr.bf16.mxu1 %v6209_v52  ;;  %v5221_v52 = vld [vmem:[%s7323_s1 + $0x86c] ss:$16 sps:$4 sm:$0xff]  }
 0x147   :  { %3416 = vmatpush1.bf16.msra.mxu1 %v5207_v48  ;;  %v41_v48 = vld [vmem:[%s7324_s0 + $0x60] sm:$0xff] }
 0x148   :  { %3170 = vmatpush1.bf16.msra.mxu0 %v5204_v47  ;;  %3417 = vmatprep.subr.bf16.mxu1 %v5215_v25  ;;  %v5291_v47 = vld [vmem:[%s7323_s1 + $0x9e8] ss:$16 sps:$4 sm:$0xff]   ;;  %v5299_v25 = vld [vmem:[%s7323_s1 + $0xa0c] ss:$16 sps:$4 sm:$0xff]  }
 0x149   :  { %3171 = vmatprep.subr.bf16.mxu0 %v5212_v49  ;;  %v5296_v49 = vld [vmem:[%s7323_s1 + $0xe04] ss:$16 sps:$4 sm:$0xff]  }
 0x14b   :  { %3418 = vmatpush1.bf16.msra.mxu1 %v5213_v51  ;;  %v5294_v51 = vld [vmem:[%s7323_s1 + $0xe00] ss:$16 sps:$4 sm:$0xff]  }
 0x14c   :  { %3172 = vmatpush1.bf16.msra.mxu0 %v5210_v50  ;;  %3419 = vmatprep.subr.bf16.mxu1 %v5221_v52  ;;  %v6815_v50 = vpack.c.bf16 %v41_v48, %v41_v48  ;;  %v5302_v52 = vld [vmem:[%s7323_s1 + $0xe24] ss:$16 sps:$4 sm:$0xff]   ;;  %v5439_v48 = vld [vmem:[%s7325_s3 + $0x50] ss:$8 sps:$4 sm:$0xff]  }
 0x14d   :  { %3173 = vmatprep.subr.bf16.mxu0 %v5218_v53  ;;  %v5297_v53 = vld [vmem:[%s7323_s1 + $0xa08] ss:$16 sps:$4 sm:$0xff]  }
 0x14f   :  { %3420 = vmatpush1.bf16.msra.mxu1 %v5219_v56  ;;  %v5300_v56 = vld [vmem:[%s7323_s1 + $0xe20] ss:$16 sps:$4 sm:$0xff]  }
 0x150   :  { %3174 = vmatpush1.bf16.msra.mxu0 %v5216_v54  ;;  %3421 = vmatprep.subr.bf16.mxu1 %v5227_v59  ;;  %v5305_v54 = vld [vmem:[%s7323_s1 + $0xa2c] ss:$16 sps:$4 sm:$0xff]   ;;  %v5308_v59 = vld [vmem:[%s7323_s1 + $0xe44] ss:$16 sps:$4 sm:$0xff]  }
 0x151   :  { %3175 = vmatprep.subr.bf16.mxu0 %v5224_v57  ;;  %v5303_v57 = vld [vmem:[%s7323_s1 + $0xa28] ss:$16 sps:$4 sm:$0xff]  }
 0x153   :  { %3422 = vmatpush1.bf16.msra.mxu1 %v5225_v61  ;;  %v5309_v61 = vld [vmem:[%s7323_s1 + $0xa48] ss:$16 sps:$4 sm:$0xff]  }
 0x154   :  { %3176 = vmatpush1.bf16.msra.mxu0 %v5222_v60  ;;  %3423 = vmatprep.subr.bf16.mxu1 %v5233_v63  ;;  %v5306_v60 = vld [vmem:[%s7323_s1 + $0xe40] ss:$16 sps:$4 sm:$0xff]  }
 0x155   :  { %3177 = vmatprep.subr.bf16.mxu0 %v5230_v62  ;;  %v5314_v62 = vld [vmem:[%s7323_s1 + $0xe64] ss:$16 sps:$4 sm:$0xff]  }
 0x156   :  { %v527_v63 = vld [vmem:[%s7323_s1 + $0xea0] sm:$0x33] }
 0x157   :  { %3424 = vmatpush1.bf16.msra.mxu1 %v5231_v2 }
 0x158   :  { %3178 = vmatpush1.bf16.msra.mxu0 %v5228_v0  ;;  %3425 = vmatprep.subr.bf16.mxu1 %v5239_v4  ;;  %v5521_v0 = vmov 65535   ;;  %v5315_v4 = vld [vmem:[%s7323_s1 + $0xa68] ss:$16 sps:$4 sm:$0xff]  }
 0x159   :  { %3179 = vmatprep.subr.bf16.mxu0 %v5236_v3  ;;  %v2907_v2 = vsel %vm2905_vm0, 4294967295, %v5521_v0  ;;  %v5312_v3 = vld [vmem:[%s7323_s1 + $0xe60] ss:$16 sps:$4 sm:$0xff]   ;;  %v5364_v0 = vld [vmem:[%s7323_s1 + $0xc2c] ss:$16 sps:$4 sm:$0xff]  }
 0x15b   :  { %3426 = vmatpush1.bf16.msra.mxu1 %v5237_v6  ;;  %v5323_v6 = vld [vmem:[%s7323_s1 + $0xa8c] ss:$16 sps:$4 sm:$0xff]  }
 0x15c   :  { %3180 = vmatpush1.bf16.msra.mxu0 %v5234_v5  ;;  %3427 = vmatprep.subr.bf16.mxu1 %v5245_v9  ;;  %v5320_v5 = vld [vmem:[%s7323_s1 + $0xe84] ss:$16 sps:$4 sm:$0xff]   ;;  %v6872_v9 = vsel %vm2906_vm1, %v2907_v2, 0  ;;  %v5451_v2 = vld [vmem:[%s7325_s3 + $0x90] ss:$8 sps:$4 sm:$0xff]  }
 0x15d   :  { %3181 = vmatprep.subr.bf16.mxu0 %v5242_v7  ;;  %v4581_v7 = vcombine.high %v527_v63, %v527_v63 }
 0x15f   :  { %3428 = vmatpush1.bf16.msra.mxu1 %v5243_v12  ;;  %v5321_v12 = vld [vmem:[%s7323_s1 + $0xa88] ss:$16 sps:$4 sm:$0xff]  }
 0x160   :  { %3182 = vmatpush1.bf16.msra.mxu0 %v5240_v10  ;;  %3429 = vmatprep.subr.bf16.mxu1 %v5251_v14  ;;  %v5318_v10 = vld [vmem:[%s7323_s1 + $0xe80] ss:$16 sps:$4 sm:$0xff]   ;;  %v2913_v14 = vand.u32 %v4581_v7, %v6872_v9  ;;  %v5370_v7 = vld [vmem:[%s7323_s1 + $0xc6c] ss:$16 sps:$4 sm:$0xff]  }
 0x161   :  { %3183 = vmatprep.subr.bf16.mxu0 %v5248_v13  ;;  %v4580_v13 = vcombine.low %v527_v63, %v527_v63  ;;  %v5359_v63 = vld [vmem:[%s7323_s1 + $0xc08] ss:$16 sps:$4 sm:$0xff]  }
 0x163   :  { %3430 = vmatpush1.bf16.msra.mxu1 %v5249_v17  ;;  %v5326_v17 = vld [vmem:[%s7323_s1 + $0xaa8] ss:$16 sps:$4 sm:$0xff]  }
 0x164   :  { %3184 = vmatpush1.bf16.msra.mxu0 %v5246_v15  ;;  %3431 = vmatprep.subr.bf16.mxu1 %v5257_v19  ;;  %v5328_v15 = vld [vmem:[%s7323_s1 + $0xaac] ss:$16 sps:$4 sm:$0xff]   ;;  %v43_v19 = vld [vmem:[%s7324_s0 + $0x70] sm:$0xff] }
 0x165   :  { %3185 = vmatprep.subr.bf16.mxu0 %v5254_v18  ;;  %v2910_v18 = vand.u32 %v4580_v13, %v6872_v9  ;;  %v5368_v13 = vld [vmem:[%s7323_s1 + $0xc68] ss:$16 sps:$4 sm:$0xff]  }
 0x167   :  { %3432 = vmatpush1.bf16.msra.mxu1 %v5255_v21  ;;  %v6894_v21 = vpack.c.bf16 %v43_v19, %v43_v19  ;;  %v5376_v19 = vld [vmem:[%s7323_s1 + $0xcac] ss:$16 sps:$4 sm:$0xff]  }
 0x168   :  { %3186 = vmatpush1.bf16.msra.mxu0 %v5252_v20  ;;  %3433 = vmatprep.subr.bf16.mxu1 %v5263_v24  ;;  %v5331_v20 = vld [vmem:[%s7323_s1 + $0xacc] ss:$16 sps:$4 sm:$0xff]  }
 0x169   :  { %3187 = vmatprep.subr.bf16.mxu0 %v5260_v22  ;;  %v5329_v22 = vld [vmem:[%s7323_s1 + $0xac8] ss:$16 sps:$4 sm:$0xff]   ;;  %v5334_v24 = vld [vmem:[%s7323_s1 + $0xaec] ss:$16 sps:$4 sm:$0xff]  }
 0x16b   :  { %3434 = vmatpush1.bf16.msra.mxu1 %v5261_v26  ;;  %v5337_v26 = vld [vmem:[%s7323_s1 + $0xb0c] ss:$16 sps:$4 sm:$0xff]  }
 0x16c   :  { %3188 = vmatpush1.bf16.msra.mxu0 %v5258_v8  ;;  %3435 = vmatprep.subr.bf16.mxu1 %v5269_v28  ;;  %v5332_v8 = vld [vmem:[%s7323_s1 + $0xae8] ss:$16 sps:$4 sm:$0xff]   ;;  %v5426_v28 = vld [vmem:[%s7325_s3 + $0x4] ss:$8 sps:$4 sm:$0xff]  }
 0x16d   :  { %3189 = vmatprep.subr.bf16.mxu0 %v5266_v27  ;;  %v5424_v27 = vld [vmem:[%s7325_s3] ss:$8 sps:$4 sm:$0xff]  }
 0x16f   :  { %3436 = vmatpush1.bf16.msra.mxu1 %v5267_v30  ;;  %v5335_v30 = vld [vmem:[%s7323_s1 + $0xb08] ss:$16 sps:$4 sm:$0xff]  }
 0x170   :  { %3190 = vmatpush1.bf16.msra.mxu0 %v5264_v29  ;;  %3437 = vmatprep.subr.bf16.mxu1 %v5275_v32  ;;  %v5429_v29 = vld [vmem:[%s7325_s3 + $0x14] ss:$8 sps:$4 sm:$0xff]   ;;  %v5427_v32 = vld [vmem:[%s7325_s3 + $0x10] ss:$8 sps:$4 sm:$0xff]  }
 0x171   :  { %3191 = vmatprep.subr.bf16.mxu0 %v5272_v11  ;;  %v5340_v11 = vld [vmem:[%s7323_s1 + $0xb2c] ss:$16 sps:$4 sm:$0xff]  }
 0x173   :  { %3438 = vmatpush1.bf16.msra.mxu1 %v5273_v34  ;;  %v5338_v34 = vld [vmem:[%s7323_s1 + $0xb28] ss:$16 sps:$4 sm:$0xff]  }
 0x174   :  { %3192 = vmatpush1.bf16.msra.mxu0 %v5270_v33  ;;  %3439 = vmatprep.subr.bf16.mxu1 %v5281_v37  ;;  %v5432_v33 = vld [vmem:[%s7325_s3 + $0x24] ss:$8 sps:$4 sm:$0xff]   ;;  %v5430_v37 = vld [vmem:[%s7325_s3 + $0x20] ss:$8 sps:$4 sm:$0xff]  }
 0x175   :  { %3193 = vmatprep.subr.bf16.mxu0 %v5278_v35  ;;  %v5343_v35 = vld [vmem:[%s7323_s1 + $0xb4c] ss:$16 sps:$4 sm:$0xff]  }
 0x177   :  { %3440 = vmatpush1.bf16.msra.mxu1 %v5279_v16  ;;  %v5341_v16 = vld [vmem:[%s7323_s1 + $0xb48] ss:$16 sps:$4 sm:$0xff]  }
 0x178   :  { %3194 = vmatpush1.bf16.msra.mxu0 %v5276_v38  ;;  %3441 = vmatprep.subr.bf16.mxu1 %v5287_v40  ;;  %v5435_v38 = vld [vmem:[%s7325_s3 + $0x34] ss:$8 sps:$4 sm:$0xff]   ;;  %v5433_v40 = vld [vmem:[%s7325_s3 + $0x30] ss:$8 sps:$4 sm:$0xff]  }
 0x179   :  { %3195 = vmatprep.subr.bf16.mxu0 %v5284_v39  ;;  %v5346_v39 = vld [vmem:[%s7323_s1 + $0xb6c] ss:$16 sps:$4 sm:$0xff]  }
 0x17b   :  { %3442 = vmatpush1.bf16.msra.mxu1 %v5285_v42  ;;  %v5344_v42 = vld [vmem:[%s7323_s1 + $0xb68] ss:$16 sps:$4 sm:$0xff]  }
 0x17c   :  { %3196 = vmatpush1.bf16.msra.mxu0 %v5282_v23  ;;  %3443 = vmatprep.subr.bf16.mxu1 %v5293_v44  ;;  %v5438_v23 = vld [vmem:[%s7325_s3 + $0x44] ss:$8 sps:$4 sm:$0xff]   ;;  %v5436_v44 = vld [vmem:[%s7325_s3 + $0x40] ss:$8 sps:$4 sm:$0xff]  }
 0x17d   :  { %3197 = vmatprep.subr.bf16.mxu0 %v5290_v43  ;;  %v5349_v43 = vld [vmem:[%s7323_s1 + $0xb8c] ss:$16 sps:$4 sm:$0xff]  }
 0x17f   :  { %3444 = vmatpush1.bf16.msra.mxu1 %v5291_v47  ;;  %v5347_v47 = vld [vmem:[%s7323_s1 + $0xb88] ss:$16 sps:$4 sm:$0xff]  }
 0x180   :  { %3198 = vmatpush1.bf16.msra.mxu0 %v5288_v45  ;;  %3454 = vmatprep.subr.bf16.mxu1 %v5299_v25  ;;  %v5441_v45 = vld [vmem:[%s7325_s3 + $0x54] ss:$8 sps:$4 sm:$0xff]   ;;  %v5444_v25 = vld [vmem:[%s7325_s3 + $0x64] ss:$8 sps:$4 sm:$0xff]  }
 0x181   :  { %3208 = vmatprep.subr.bf16.mxu0 %v5296_v49  ;;  %v5352_v49 = vld [vmem:[%s7323_s1 + $0xbac] ss:$16 sps:$4 sm:$0xff]  }
 0x182   :  { %3446 = vmatmul.mubr.bf16.vlgmr.msra.gmra.mrb[4].mxu1 %v6401_v31  ;;  %v5311_v31 = vld [vmem:[%s7323_s1 + $0xa4c] ss:$16 sps:$4 sm:$0xff]  }
 0x183   :  { %3200 = vmatmul.mubr.bf16.vlgmr.msra.gmra.mrb[0].mxu0 %v6815_v50  ;;  %3455 = vmatpush1.bf16.msra.mxu1 %v5297_v53  ;;  %v5442_v53 = vld [vmem:[%s7325_s3 + $0x60] ss:$8 sps:$4 sm:$0xff]  }
 0x184   :  { %3209 = vmatpush1.bf16.msra.mxu0 %v5294_v51  ;;  %3456 = vmatprep.subr.bf16.mxu1 %v5305_v54  ;;  %v5350_v51 = vld [vmem:[%s7323_s1 + $0xba8] ss:$16 sps:$4 sm:$0xff]   ;;  %v5447_v54 = vld [vmem:[%s7325_s3 + $0x74] ss:$8 sps:$4 sm:$0xff]  }
 0x185   :  { %3210 = vmatprep.subr.bf16.mxu0 %v5302_v52  ;;  %3240 = vmatprep.mubr.bf16.mxu0 %v5520_v1  ;;  %v5355_v52 = vld [vmem:[%s7323_s1 + $0xbcc] ss:$16 sps:$4 sm:$0xff]  }
 0x186   :  { %3486 = vmatprep.mubr.bf16.mxu1 %v6415_v36  ;;  %v5317_v36 = vld [vmem:[%s7323_s1 + $0xa6c] ss:$16 sps:$4 sm:$0xff]  }
 0x187   :  { %3457 = vmatpush1.bf16.msra.mxu1 %v5303_v57  ;;  %v5445_v57 = vld [vmem:[%s7325_s3 + $0x70] ss:$8 sps:$4 sm:$0xff]  }
 0x188   :  { %3211 = vmatpush1.bf16.msra.mxu0 %v5300_v56  ;;  %3458 = vmatprep.subr.bf16.mxu1 %v5311_v31  ;;  %v5353_v56 = vld [vmem:[%s7323_s1 + $0xbc8] ss:$16 sps:$4 sm:$0xff]   ;;  %v5450_v31 = vld [vmem:[%s7325_s3 + $0x84] ss:$8 sps:$4 sm:$0xff]  }
 0x189   :  { %3212 = vmatprep.subr.bf16.mxu0 %v5308_v59  ;;  %v5358_v59 = vld [vmem:[%s7323_s1 + $0xbec] ss:$16 sps:$4 sm:$0xff]  }
 0x18b   :  { %3459 = vmatpush1.bf16.msra.mxu1 %v5309_v61  ;;  %v5448_v61 = vld [vmem:[%s7325_s3 + $0x80] ss:$8 sps:$4 sm:$0xff]  }
 0x18c   :  { %3213 = vmatpush1.bf16.msra.mxu0 %v5306_v60  ;;  %3460 = vmatprep.subr.bf16.mxu1 %v5317_v36  ;;  %v5356_v60 = vld [vmem:[%s7323_s1 + $0xbe8] ss:$16 sps:$4 sm:$0xff]   ;;  %v5453_v36 = vld [vmem:[%s7325_s3 + $0x94] ss:$8 sps:$4 sm:$0xff]  }
 0x18d   :  { %3214 = vmatprep.subr.bf16.mxu0 %v5314_v62  ;;  %v5361_v62 = vld [vmem:[%s7323_s1 + $0xc0c] ss:$16 sps:$4 sm:$0xff]  }
 0x18f   :  { %3461 = vmatpush1.bf16.msra.mxu1 %v5315_v4  ;;  %v5362_v4 = vld [vmem:[%s7323_s1 + $0xc28] ss:$16 sps:$4 sm:$0xff]  }
 0x190   :  { %3215 = vmatpush1.bf16.msra.mxu0 %v5312_v3  ;;  %3462 = vmatprep.subr.bf16.mxu1 %v5323_v6  ;;  %v5456_v3 = vld [vmem:[%s7325_s3 + $0xa4] ss:$8 sps:$4 sm:$0xff]   ;;  %v5454_v6 = vld [vmem:[%s7325_s3 + $0xa0] ss:$8 sps:$4 sm:$0xff]  }
 0x191   :  { %3216 = vmatprep.subr.bf16.mxu0 %v5320_v5  ;;  %v5367_v5 = vld [vmem:[%s7323_s1 + $0xc4c] ss:$16 sps:$4 sm:$0xff]  }
 0x193   :  { %3463 = vmatpush1.bf16.msra.mxu1 %v5321_v12  ;;  %v5462_v12 = vld [vmem:[%s7325_s3 + $0xc4] ss:$8 sps:$4 sm:$0xff]  }
 0x194   :  { %3217 = vmatpush1.bf16.msra.mxu0 %v5318_v10  ;;  %3464 = vmatprep.subr.bf16.mxu1 %v5328_v15  ;;  %v5457_v10 = vld [vmem:[%s7325_s3 + $0xb0] ss:$8 sps:$4 sm:$0xff]   ;;  %v5460_v15 = vld [vmem:[%s7325_s3 + $0xc0] ss:$8 sps:$4 sm:$0xff]  }
 0x195   :  { %3218 = vmatprep.subr.bf16.mxu0 %v2913_v14  ;;  %v5373_v14 = vld [vmem:[%s7323_s1 + $0xc8c] ss:$16 sps:$4 sm:$0xff]  }
 0x197   :  { %3465 = vmatpush1.bf16.msra.mxu1 %v5326_v17  ;;  %v5465_v17 = vld [vmem:[%s7325_s3 + $0xd4] ss:$8 sps:$4 sm:$0xff]  }
 0x198   :  { %3219 = vmatpush1.bf16.msra.mxu0 %v2910_v18  ;;  %3466 = vmatprep.subr.bf16.mxu1 %v5331_v20  ;;  %v5371_v18 = vld [vmem:[%s7323_s1 + $0xc88] ss:$16 sps:$4 sm:$0xff]  }
 0x199   :  { %3989 = vmatprep.subr.bf16.mxu0 %v5426_v28  ;;  %v5463_v20 = vld [vmem:[%s7325_s3 + $0xd0] ss:$8 sps:$4 sm:$0xff]   ;;  %v5385_v28 = vld [vmem:[%s7323_s1 + $0xd0c] ss:$16 sps:$4 sm:$0xff]  }
 0x19b   :  { %4584 = vmatmul.mubr.msk.bf16.vlgmr.msra.gmra.mrb[0].mxu0 %vm2901_vm2, %v6894_v21  ;;  %3467 = vmatpush1.bf16.msra.mxu1 %v5329_v22  ;;  %v5374_v22 = vld [vmem:[%s7323_s1 + $0xca8] ss:$16 sps:$4 sm:$0xff]  }
 0x19c   :  { %3468 = vmatprep.subr.bf16.mxu1 %v5334_v24  ;;  %3990 = vmatpush1.bf16.msra.mxu0 %v5424_v27  ;;  %v5379_v24 = vld [vmem:[%s7323_s1 + $0xccc] ss:$16 sps:$4 sm:$0xff]   ;;  %v5380_v27 = vld [vmem:[%s7323_s1 + $0xce8] ss:$16 sps:$4 sm:$0xff]  }
 0x19d   :  { %3991 = vmatprep.subr.bf16.mxu0 %v5429_v29  ;;  %v5383_v29 = vld [vmem:[%s7323_s1 + $0xd08] ss:$16 sps:$4 sm:$0xff]  }
 0x19f   :  { %3469 = vmatpush1.bf16.msra.mxu1 %v5332_v8  ;;  %v5377_v8 = vld [vmem:[%s7323_s1 + $0xcc8] ss:$16 sps:$4 sm:$0xff]  }
 0x1a0   :  { %3470 = vmatprep.subr.bf16.mxu1 %v5337_v26  ;;  %3992 = vmatpush1.bf16.msra.mxu0 %v5427_v32  ;;  %v5382_v26 = vld [vmem:[%s7323_s1 + $0xcec] ss:$16 sps:$4 sm:$0xff]  }
 0x1a1   :  { %3993 = vmatprep.subr.bf16.mxu0 %v5432_v33  ;;  %v5391_v32 = vld [vmem:[%s7323_s1 + $0xd4c] ss:$16 sps:$4 sm:$0xff]   ;;  %v5389_v33 = vld [vmem:[%s7323_s1 + $0xd48] ss:$16 sps:$4 sm:$0xff]  }
 0x1a3   :  { %3471 = vmatpush1.bf16.msra.mxu1 %v5335_v30  ;;  %v5388_v30 = vld [vmem:[%s7323_s1 + $0xd2c] ss:$16 sps:$4 sm:$0xff]  }
 0x1a4   :  { %3472 = vmatprep.subr.bf16.mxu1 %v5340_v11  ;;  %3994 = vmatpush1.bf16.msra.mxu0 %v5430_v37  ;;  %v5386_v11 = vld [vmem:[%s7323_s1 + $0xd28] ss:$16 sps:$4 sm:$0xff]   ;;  %v5397_v37 = vld [vmem:[%s7323_s1 + $0xd8c] ss:$16 sps:$4 sm:$0xff]  }
 0x1a5   :  { %3995 = vmatprep.subr.bf16.mxu0 %v5435_v38  ;;  %v5468_v38 = vld [vmem:[%s7325_s3 + $0xe4] ss:$8 sps:$4 sm:$0xff]  }
 0x1a7   :  { %3473 = vmatpush1.bf16.msra.mxu1 %v5338_v34  ;;  %v5394_v34 = vld [vmem:[%s7323_s1 + $0xd6c] ss:$16 sps:$4 sm:$0xff]  }
 0x1a8   :  { %3474 = vmatprep.subr.bf16.mxu1 %v5343_v35  ;;  %3996 = vmatpush1.bf16.msra.mxu0 %v5433_v40  ;;  %v5392_v35 = vld [vmem:[%s7323_s1 + $0xd68] ss:$16 sps:$4 sm:$0xff]   ;;  %v5400_v40 = vld [vmem:[%s7323_s1 + $0xdac] ss:$16 sps:$4 sm:$0xff]  }
 0x1a9   :  { %3997 = vmatprep.subr.bf16.mxu0 %v5438_v23  ;;  %v5471_v23 = vld [vmem:[%s7325_s3 + $0xf4] ss:$8 sps:$4 sm:$0xff]  }
 0x1ab   :  { %3475 = vmatpush1.bf16.msra.mxu1 %v5341_v16  ;;  %v5466_v16 = vld [vmem:[%s7325_s3 + $0xe0] ss:$8 sps:$4 sm:$0xff]  }
 0x1ac   :  { %3476 = vmatprep.subr.bf16.mxu1 %v5346_v39  ;;  %3998 = vmatpush1.bf16.msra.mxu0 %v5436_v44  ;;  %v5395_v39 = vld [vmem:[%s7323_s1 + $0xd88] ss:$16 sps:$4 sm:$0xff]   ;;  %v5403_v44 = vld [vmem:[%s7323_s1 + $0xdcc] ss:$16 sps:$4 sm:$0xff]  }
 0x1ad   :  { %3999 = vmatprep.subr.bf16.mxu0 %v5441_v45  ;;  %v5401_v45 = vld [vmem:[%s7323_s1 + $0xdc8] ss:$16 sps:$4 sm:$0xff]  }
 0x1af   :  { %3477 = vmatpush1.bf16.msra.mxu1 %v5344_v42  ;;  %v5469_v42 = vld [vmem:[%s7325_s3 + $0xf0] ss:$8 sps:$4 sm:$0xff]  }
 0x1b0   :  { %3478 = vmatprep.subr.bf16.mxu1 %v5349_v43  ;;  %4000 = vmatpush1.bf16.msra.mxu0 %v5439_v48  ;;  %v5398_v43 = vld [vmem:[%s7323_s1 + $0xda8] ss:$16 sps:$4 sm:$0xff]   ;;  %v5406_v48 = vld [vmem:[%s7323_s1 + $0xdec] ss:$16 sps:$4 sm:$0xff]  }
 0x1b1   :  { %4001 = vmatprep.subr.bf16.mxu0 %v5444_v25  ;;  %v5409_v25 = vld [vmem:[%s7323_s1 + $0xe0c] ss:$16 sps:$4 sm:$0xff]  }
 0x1b3   :  { %3479 = vmatpush1.bf16.msra.mxu1 %v5347_v47  ;;  %v5474_v47 = vld [vmem:[%s7325_s3 + $0x104] ss:$8 sps:$4 sm:$0xff]  }
 0x1b4   :  { %3480 = vmatprep.subr.bf16.mxu1 %v5352_v49  ;;  %4002 = vmatpush1.bf16.msra.mxu0 %v5442_v53  ;;  %v5404_v49 = vld [vmem:[%s7323_s1 + $0xde8] ss:$16 sps:$4 sm:$0xff]   ;;  %v5412_v53 = vld [vmem:[%s7323_s1 + $0xe2c] ss:$16 sps:$4 sm:$0xff]  }
 0x1b5   :  { %4003 = vmatprep.subr.bf16.mxu0 %v5447_v54  ;;  %v5415_v54 = vld [vmem:[%s7323_s1 + $0xe4c] ss:$16 sps:$4 sm:$0xff]  }
 0x1b7   :  { %3481 = vmatpush1.bf16.msra.mxu1 %v5350_v51  ;;  %v5407_v51 = vld [vmem:[%s7323_s1 + $0xe08] ss:$16 sps:$4 sm:$0xff]  }
 0x1b8   :  { %3482 = vmatprep.subr.bf16.mxu1 %v5355_v52  ;;  %4004 = vmatpush1.bf16.msra.mxu0 %v5445_v57  ;;  %v5410_v52 = vld [vmem:[%s7323_s1 + $0xe28] ss:$16 sps:$4 sm:$0xff]  }
 0x1b9   :  { %4005 = vmatprep.subr.bf16.mxu0 %v5450_v31  ;;  %v528_v57 = vld [vmem:[%s7323_s1 + $0xea8] sm:$0x33] }
 0x1ba   :  { %v4583_v31 = vcombine.high %v528_v57, %v528_v57 }
 0x1bb   :  { %3483 = vmatpush1.bf16.msra.mxu1 %v5353_v56  ;;  %v5413_v56 = vld [vmem:[%s7323_s1 + $0xe48] ss:$16 sps:$4 sm:$0xff]  }
 0x1bc   :  { %3484 = vmatprep.subr.bf16.mxu1 %v5358_v59  ;;  %4006 = vmatpush1.bf16.msra.mxu0 %v5448_v61  ;;  %v5421_v59 = vld [vmem:[%s7323_s1 + $0xe8c] ss:$16 sps:$4 sm:$0xff]   ;;  %v4582_v61 = vcombine.low %v528_v57, %v528_v57 }
 0x1bd   :  { %4007 = vmatprep.subr.bf16.mxu0 %v5453_v36 }
 0x1be   :  { %v2916_v36 = vand.u32 %v4582_v61, %v6872_v9 }
 0x1bf   :  { %3485 = vmatpush1.bf16.msra.mxu1 %v5356_v60  ;;  %v5419_v60 = vld [vmem:[%s7323_s1 + $0xe88] ss:$16 sps:$4 sm:$0xff]  }
 0x1c0   :  { %3495 = vmatprep.subr.bf16.mxu1 %v5361_v62  ;;  %4008 = vmatpush1.bf16.msra.mxu0 %v5451_v2  ;;  %v2919_v62 = vand.u32 %v4583_v31, %v6872_v9 }
 0x1c1   :  { %4009 = vmatprep.subr.bf16.mxu0 %v5456_v3  ;;  %v7199_v3 = vld [vmem:[%s7326_s2] sm:$0xf] }
 0x1c2   :  { %3487 = vmatmul.mubr.bf16.vlgmr.msra.gmra.mrb[4].mxu1 %v6609_v41  ;;  %v5459_v41 = vld [vmem:[%s7325_s3 + $0xb4] ss:$8 sps:$4 sm:$0xff]  }
 0x1c3   :  { %3496 = vmatpush1.bf16.msra.mxu1 %v5359_v63  ;;  %3527 = vmatprep.mubr.bf16.mxu1 %v6626_v46  ;;  %v5365_v46 = vld [vmem:[%s7323_s1 + $0xc48] ss:$16 sps:$4 sm:$0xff]   ;;  %v531_v63 = vlaneseq }
 0x1c4   :  { %3497 = vmatprep.subr.bf16.mxu1 %v5364_v0  ;;  %4010 = vmatpush1.bf16.msra.mxu0 %v5454_v6 }
 0x1c5   :  { %4011 = vmatprep.subr.bf16.mxu0 %v5459_v41  ;;  %v7191_v0 = vshrl.u32 %v531_v63, 7 }
 0x1c7   :  { %3498 = vmatpush1.bf16.msra.mxu1 %v5362_v4  ;;  %v7194_v2 = vsub.s32 0, %v7191_v0  ;;  %v7202_v4 = vsub.s32 1, %v7191_v0 }
 0x1c8   :  { %3499 = vmatprep.subr.bf16.mxu1 %v5367_v5  ;;  %4012 = vmatpush1.bf16.msra.mxu0 %v5457_v10 }
 0x1c9   :  { %4013 = vmatprep.subr.bf16.mxu0 %v5462_v12  ;;  %v534_v9 = vrot.slane %v7199_v3, %v7194_v2 }
 0x1cb   :  { %3500 = vmatpush1.bf16.msra.mxu1 %v5365_v46  ;;  %v2956_v5 = vadd.f32 %v6481_v55, %v534_v9 }
 0x1cc   :  { %3501 = vmatprep.subr.bf16.mxu1 %v5370_v7  ;;  %4014 = vmatpush1.bf16.msra.mxu0 %v5460_v15 }
 0x1cd   :  { %4015 = vmatprep.subr.bf16.mxu0 %v5465_v17 }
 0x1cf   :  { %3502 = vmatpush1.bf16.msra.mxu1 %v5368_v13 }
 0x1d0   :  { %3503 = vmatprep.subr.bf16.mxu1 %v5373_v14  ;;  %4016 = vmatpush1.bf16.msra.mxu0 %v5463_v20  ;;  %v5472_v20 = vld [vmem:[%s7325_s3 + $0x100] ss:$8 sps:$4 sm:$0xff]  }
 0x1d1   :  { %4017 = vmatprep.subr.bf16.mxu0 %v5468_v38  ;;  %v5496_v38 = vld [vmem:[%s7325_s3 + $0x180] ss:$8 sps:$4 sm:$0xff]  }
 0x1d3   :  { %3504 = vmatpush1.bf16.msra.mxu1 %v5371_v18 }
 0x1d4   :  { %3505 = vmatprep.subr.bf16.mxu1 %v5376_v19  ;;  %4018 = vmatpush1.bf16.msra.mxu0 %v5466_v16  ;;  %v5501_v16 = vld [vmem:[%s7325_s3 + $0x194] ss:$8 sps:$4 sm:$0xff]  }
 0x1d5   :  { %4019 = vmatprep.subr.bf16.mxu0 %v5471_v23  ;;  %v5502_v23 = vld [vmem:[%s7325_s3 + $0x1a0] ss:$8 sps:$4 sm:$0xff]  }
 0x1d7   :  { %3506 = vmatpush1.bf16.msra.mxu1 %v5374_v22  ;;  %v5475_v22 = vld [vmem:[%s7325_s3 + $0x110] ss:$8 sps:$4 sm:$0xff]  }
 0x1d8   :  { %3507 = vmatprep.subr.bf16.mxu1 %v5379_v24  ;;  %4020 = vmatpush1.bf16.msra.mxu0 %v5469_v42  ;;  %v5480_v24 = vld [vmem:[%s7325_s3 + $0x124] ss:$8 sps:$4 sm:$0xff]   ;;  %v5507_v42 = vld [vmem:[%s7325_s3 + $0x1b4] ss:$8 sps:$4 sm:$0xff]  }
 0x1d9   :  { %4030 = vmatprep.subr.bf16.mxu0 %v5474_v47  ;;  %v5513_v47 = vld [vmem:[%s7325_s3 + $0x1d4] ss:$8 sps:$4 sm:$0xff]  }
 0x1db   :  { %3508 = vmatpush1.bf16.msra.mxu1 %v5377_v8  ;;  %v5478_v8 = vld [vmem:[%s7325_s3 + $0x120] ss:$8 sps:$4 sm:$0xff]  }
 0x1dc   :  { %3509 = vmatprep.subr.bf16.mxu1 %v5382_v26  ;;  %v5483_v26 = vld [vmem:[%s7325_s3 + $0x134] ss:$8 sps:$4 sm:$0xff]  }
 0x1df   :  { %3510 = vmatpush1.bf16.msra.mxu1 %v5380_v27  ;;  %v5481_v27 = vld [vmem:[%s7325_s3 + $0x130] ss:$8 sps:$4 sm:$0xff]  }
 0x1e0   :  { %3511 = vmatprep.subr.bf16.mxu1 %v5385_v28  ;;  %v5486_v28 = vld [vmem:[%s7325_s3 + $0x144] ss:$8 sps:$4 sm:$0xff]  }
 0x1e3   :  { %3512 = vmatpush1.bf16.msra.mxu1 %v5383_v29  ;;  %v5484_v29 = vld [vmem:[%s7325_s3 + $0x140] ss:$8 sps:$4 sm:$0xff]  }
 0x1e4   :  { %3513 = vmatprep.subr.bf16.mxu1 %v5388_v30  ;;  %v5489_v30 = vld [vmem:[%s7325_s3 + $0x154] ss:$8 sps:$4 sm:$0xff]  }
 0x1e7   :  { %3514 = vmatpush1.bf16.msra.mxu1 %v5386_v11  ;;  %v5487_v11 = vld [vmem:[%s7325_s3 + $0x150] ss:$8 sps:$4 sm:$0xff]  }
 0x1e8   :  { %3515 = vmatprep.subr.bf16.mxu1 %v5391_v32  ;;  %v5492_v32 = vld [vmem:[%s7325_s3 + $0x164] ss:$8 sps:$4 sm:$0xff]  }
 0x1eb   :  { %3516 = vmatpush1.bf16.msra.mxu1 %v5389_v33  ;;  %v5490_v33 = vld [vmem:[%s7325_s3 + $0x160] ss:$8 sps:$4 sm:$0xff]  }
 0x1ec   :  { %3517 = vmatprep.subr.bf16.mxu1 %v5394_v34  ;;  %v5495_v34 = vld [vmem:[%s7325_s3 + $0x174] ss:$8 sps:$4 sm:$0xff]  }
 0x1ef   :  { %3518 = vmatpush1.bf16.msra.mxu1 %v5392_v35  ;;  %v5493_v35 = vld [vmem:[%s7325_s3 + $0x170] ss:$8 sps:$4 sm:$0xff]  }
 0x1f0   :  { %3519 = vmatprep.subr.bf16.mxu1 %v5397_v37  ;;  %v5498_v37 = vld [vmem:[%s7325_s3 + $0x184] ss:$8 sps:$4 sm:$0xff]  }
 0x1f3   :  { %3520 = vmatpush1.bf16.msra.mxu1 %v5395_v39  ;;  %v5499_v39 = vld [vmem:[%s7325_s3 + $0x190] ss:$8 sps:$4 sm:$0xff]  }
 0x1f4   :  { %3521 = vmatprep.subr.bf16.mxu1 %v5400_v40  ;;  %v5504_v40 = vld [vmem:[%s7325_s3 + $0x1a4] ss:$8 sps:$4 sm:$0xff]  }
 0x1f7   :  { %3522 = vmatpush1.bf16.msra.mxu1 %v5398_v43  ;;  %v5505_v43 = vld [vmem:[%s7325_s3 + $0x1b0] ss:$8 sps:$4 sm:$0xff]  }
 0x1f8   :  { %3523 = vmatprep.subr.bf16.mxu1 %v5403_v44  ;;  %v5510_v44 = vld [vmem:[%s7325_s3 + $0x1c4] ss:$8 sps:$4 sm:$0xff]  }
 0x1fb   :  { %3524 = vmatpush1.bf16.msra.mxu1 %v5401_v45  ;;  %v5508_v45 = vld [vmem:[%s7325_s3 + $0x1c0] ss:$8 sps:$4 sm:$0xff]  }
 0x1fc   :  { %3525 = vmatprep.subr.bf16.mxu1 %v5406_v48  ;;  %v5511_v48 = vld [vmem:[%s7325_s3 + $0x1d0] ss:$8 sps:$4 sm:$0xff]  }
 0x1ff   :  { %3526 = vmatpush1.bf16.msra.mxu1 %v5404_v49  ;;  %v5516_v49 = vld [vmem:[%s7325_s3 + $0x1e4] ss:$8 sps:$4 sm:$0xff]  }
 0x200   :  { %3536 = vmatprep.subr.bf16.mxu1 %v5409_v25  ;;  %v5514_v25 = vld [vmem:[%s7325_s3 + $0x1e0] ss:$8 sps:$4 sm:$0xff]  }
 0x202   :  { %3528 = vmatmul.mubr.bf16.vlgmr.msra.gmra.mrb[4].mxu1 %v6815_v50  ;;  %v5418_v50 = vld [vmem:[%s7323_s1 + $0xe6c] ss:$16 sps:$4 sm:$0xff]  }
 0x203   :  { %3537 = vmatpush1.bf16.msra.mxu1 %v5407_v51  ;;  %3568 = vmatprep.mubr.bf16.mxu1 %v5520_v1  ;;  %v5416_v1 = vld [vmem:[%s7323_s1 + $0xe68] ss:$16 sps:$4 sm:$0xff]   ;;  %v5519_v51 = vld [vmem:[%s7325_s3 + $0x1f4] ss:$8 sps:$4 sm:$0xff]  }
 0x204   :  { %3538 = vmatprep.subr.bf16.mxu1 %v5412_v53  ;;  %v5517_v53 = vld [vmem:[%s7325_s3 + $0x1f0] ss:$8 sps:$4 sm:$0xff]  }
 0x207   :  { %3539 = vmatpush1.bf16.msra.mxu1 %v5410_v52  ;;  %v541_v52 = vsub.s32 2, %v7191_v0 }
 0x208   :  { %3540 = vmatprep.subr.bf16.mxu1 %v5415_v54  ;;  %v545_v54 = vsub.s32 3, %v7191_v0  ;;  %v12_v0 = vstv %s7327_s6 }
 0x209   :  { %13 = vst [vmem:[#allocation2] sm:$0x1] %v12_v0 }
 0x20b   :  { %3541 = vmatpush1.bf16.msra.mxu1 %v5413_v56  ;;  %v542_v56 = vrot.slane %v7199_v3, %v541_v52 }
 0x20c   :  { %3542 = vmatprep.subr.bf16.mxu1 %v5418_v50  ;;  %v546_v50 = vrot.slane %v7199_v3, %v545_v54 }
 0x20f   :  { %3543 = vmatpush1.bf16.msra.mxu1 %v5416_v1 }
 0x210   :  { %3544 = vmatprep.subr.bf16.mxu1 %v5421_v59 }
 0x213   :  { %3545 = vmatpush1.bf16.msra.mxu1 %v5419_v60 }
 0x214   :  { %3546 = vmatprep.subr.bf16.mxu1 %v2919_v62 }
 0x217   :  { %3547 = vmatpush1.bf16.msra.mxu1 %v2916_v36 }
 0x21a   :  { %4585 = vmatmul.mubr.msk.bf16.vlgmr.msra.gmra.mrb[4].mxu1 %vm2901_vm2, %v6894_v21  ;;  %v538_v21 = vrot.slane %v7199_v3, %v7202_v4  ;;  %v3657_v3 = vld [vmem:[%s7328_s4] sm:$0x3] }
 0x21c   :  { %v2958_v6 = vadd.f32 %v6489_v58, %v538_v21  ;;  %v5477_v58 = vld [vmem:[%s7325_s3 + $0x114] ss:$8 sps:$4 sm:$0xff]  }
 0x26e   :  { %v3242_v41 = vpop.f32.mrb[0].mxu0 }
 0x26f   :  { %v4652_v46 = vadd.f32 %v3242_v41, %v2956_v5  ;;  %v3244_v7 = vpop.f32.mrb[1].mxu0  ;;  %v3666_v41 = vrot.slane %v3657_v3, %v7202_v4 }
 0x270   :  { %v4654_v10 = vadd.f32 %v3244_v7, %v2958_v6  ;;  %v3246_v12 = vpop.f32.mrb[2].mxu0  ;;  %v3662_v6 = vrot.slane %v3657_v3, %v7194_v2 }
 0x271   :  { %vm3577_vm3 = vcmp.gt.f32.partialorder %v4652_v46, 0.0  ;;  %v3581_v13 = vmul.f32 0.2, %v4652_v46  ;;  %v3247_v14 = vpop.f32.mrb[3].mxu0 }
 0x272   :  { %vm3578_vm4 = vcmp.gt.f32.partialorder %v4654_v10, 0.0  ;;  %v3582_v15 = vmul.f32 0.2, %v4654_v10 }
 0x273   :  { %v3585_v17 = vsel %vm3577_vm3, %v4652_v46, %v3581_v13  ;;  %v4077_v46 = vld [vmem:[%s7329_s5] sm:$0x3] }
 0x274   :  { %v3586_v18 = vsel %vm3578_vm4, %v4654_v10, %v3582_v15  ;;  %v3589_v55 = vpack.c.bf16 %v3585_v17, %v3585_v17  ;;  %v4082_v15 = vrot.slane %v4077_v46, %v7194_v2 }
 0x275   :  { %v3590_v19 = vpack.c.bf16 %v3586_v18, %v3586_v18 }
 0x277   :  { %4021 = vmatprep.mubr.bf16.mxu0 %v3590_v19  ;;  %v4086_v19 = vrot.slane %v4077_v46, %v7202_v4 }
 0x278   :  { %4022 = vmatmul.mubr.bf16.vlgmr.msra.gmra.mrb[4].mxu0 %v3589_v55 }
 0x279   :  { %4031 = vmatpush1.bf16.msra.mxu0 %v5472_v20 }
 0x27a   :  { %4032 = vmatprep.subr.bf16.mxu0 %v5477_v58 }
 0x27d   :  { %4033 = vmatpush1.bf16.msra.mxu0 %v5475_v22 }
 0x27e   :  { %4034 = vmatprep.subr.bf16.mxu0 %v5480_v24 }
 0x281   :  { %4035 = vmatpush1.bf16.msra.mxu0 %v5478_v8 }
 0x282   :  { %4036 = vmatprep.subr.bf16.mxu0 %v5483_v26  ;;  %v4650_v26 = vld [vmem:[#allocation2] ss:$0 sm:$0xff] }
 0x285   :  { %4037 = vmatpush1.bf16.msra.mxu0 %v5481_v27 }
 0x286   :  { %4038 = vmatprep.subr.bf16.mxu0 %v5486_v28 }
 0x289   :  { %4039 = vmatpush1.bf16.msra.mxu0 %v5484_v29 }
 0x28a   :  { %4040 = vmatprep.subr.bf16.mxu0 %v5489_v30 }
 0x28d   :  { %4041 = vmatpush1.bf16.msra.mxu0 %v5487_v11 }
 0x28e   :  { %4042 = vmatprep.subr.bf16.mxu0 %v5492_v32 }
 0x291   :  { %4043 = vmatpush1.bf16.msra.mxu0 %v5490_v33 }
 0x292   :  { %4044 = vmatprep.subr.bf16.mxu0 %v5495_v34 }
 0x295   :  { %4045 = vmatpush1.bf16.msra.mxu0 %v5493_v35 }
 0x296   :  { %4046 = vmatprep.subr.bf16.mxu0 %v5498_v37 }
 0x299   :  { %4047 = vmatpush1.bf16.msra.mxu0 %v5496_v38 }
 0x29a   :  { %4048 = vmatprep.subr.bf16.mxu0 %v5501_v16 }
 0x29d   :  { %4049 = vmatpush1.bf16.msra.mxu0 %v5499_v39 }
 0x29e   :  { %4050 = vmatprep.subr.bf16.mxu0 %v5504_v40 }
 0x2a1   :  { %4051 = vmatpush1.bf16.msra.mxu0 %v5502_v23 }
 0x2a2   :  { %4052 = vmatprep.subr.bf16.mxu0 %v5507_v42 }
 0x2a5   :  { %4053 = vmatpush1.bf16.msra.mxu0 %v5505_v43 }
 0x2a6   :  { %4054 = vmatprep.subr.bf16.mxu0 %v5510_v44 }
 0x2a9   :  { %4055 = vmatpush1.bf16.msra.mxu0 %v5508_v45 }
 0x2aa   :  { %4056 = vmatprep.subr.bf16.mxu0 %v5513_v47 }
 0x2ad   :  { %4057 = vmatpush1.bf16.msra.mxu0 %v5511_v48 }
 0x2ae   :  { %4058 = vmatprep.subr.bf16.mxu0 %v5516_v49 }
 0x2b1   :  { %4059 = vmatpush1.bf16.msra.mxu0 %v5514_v25 }
 0x2b2   :  { %4060 = vmatprep.subr.bf16.mxu0 %v5519_v51 }
 0x2b5   :  { %4061 = vmatpush1.bf16.msra.mxu0 %v5517_v53 }
 0x2ed   :  { %v3570_v57 = vpop.f32.mrb[4].mxu1 }
 0x2ee   :  { %v4655_v1 = vadd.f32 %v3570_v57, %v542_v56  ;;  %v3572_v59 = vpop.f32.mrb[5].mxu1 }
 0x2ef   :  { %v4656_v31 = vadd.f32 %v3572_v59, %v546_v50  ;;  %v3574_v60 = vpop.f32.mrb[6].mxu1 }
 0x2f0   :  { %vm3579_vm5 = vcmp.gt.f32.partialorder %v4655_v1, 0.0  ;;  %v3583_v61 = vmul.f32 0.2, %v4655_v1  ;;  %v3575_v62 = vpop.f32.mrb[7].mxu1 }
 0x2f1   :  { %vm3580_vm6 = vcmp.gt.f32.partialorder %v4656_v31, 0.0  ;;  %v3584_v36 = vmul.f32 0.2, %v4656_v31 }
 0x2f2   :  { %v3587_v63 = vsel %vm3579_vm5, %v4655_v1, %v3583_v61 }
 0x2f3   :  { %v3588_v9 = vsel %vm3580_vm6, %v4656_v31, %v3584_v36  ;;  %v3591_v5 = vpack.c.bf16 %v3587_v63, %v3587_v63 }
 0x2f4   :  { %v3592_v21 = vpack.c.bf16 %v3588_v9, %v3588_v9 }
 0x2f6   :  { %4062 = vmatprep.mubr.bf16.mxu0 %v3592_v21 }
 0x2f7   :  { %4063 = vmatmul.mubr.bf16.vlgmr.msra.gmra.mrb[4].mxu0 %v3591_v5 }
 0x3ca   :  { %v4064_v7 = vpop.f32.mrb[4].mxu0 }
 0x3cb   :  { %v4657_v10 = vadd.f32 %v4064_v7, %v3662_v6  ;;  %v4066_v12 = vpop.f32.mrb[5].mxu0 }
 0x3cc   :  { %v4658_v13 = vadd.f32 %v4066_v12, %v3666_v41  ;;  %v4068_v14 = vpop.f32.mrb[6].mxu0 }
 0x3cd   :  { %vm4071_vm7 = vcmp.gt.f32.partialorder %v4657_v10, 0.0  ;;  %v4073_v17 = vmul.f32 0.2, %v4657_v10  ;;  %v4069_v18 = vpop.f32.mrb[7].mxu0 }
 0x3ce   :  { %vm4072_vm8 = vcmp.gt.f32.partialorder %v4658_v13, 0.0  ;;  %v4074_v20 = vmul.f32 0.2, %v4658_v13 }
 0x3cf   :  { %v4075_v55 = vsel %vm4071_vm7, %v4657_v10, %v4073_v17 }
 0x3d0   :  { %v4076_v58 = vsel %vm4072_vm8, %v4658_v13, %v4074_v20  ;;  %v4089_v22 = vmul.f32 %v4082_v15, %v4075_v55 }
 0x3d1   :  { %v4090_v24 = vmul.f32 %v4086_v19, %v4076_v58 }
 0x3d3   :  { %v4091_v8 = vadd.f32 %v4090_v24, %v4089_v22 }
 0x3d5   :  { %4092 = vadd.xlane.f32.xlu0 %v4091_v8 }
 0x462   :  { %v4093_v27 = vpop.xlane.xlu0 %4092 }
 0x463   :  { %v4101_v28 = vadd.f32 %v4650_v26, %v4093_v27 }
 0x465   :  { %4104 = vperm.xlu0 %4717, %v4101_v28  }
 0x4e4   :  { %v4105_v29 = vpop.permute.xlu0 %4104 }
 0x4e5   :  { %4107 = vst [vmem:[%s7330_s7] sm:$0xff] %v4105_v29 }

</bundles_post_ra>
